<compile_context>
chip_gen: v5e
topology: v5e:2x2
jax: 0.10.0
libtpu: 0.0.40
codegen_flags: <defaults>
</compile_context>

<pallas_src>
import functools
import math

import jax
import jax.numpy as jnp
from jax.experimental import pallas as pl
from jax.experimental.pallas import tpu as pltpu


def _upsample_squeeze_kernel(x_ref, o_ref, *, up, factor):
    # x_ref: (rt, t_in)          rows of the flattened (B*C, T) input
    # o_ref: (rt*factor, t_out)  rows of the flattened (B*C*factor, Lout) output
    # with t_in * up == t_out * factor and
    #   out[r*factor + f, j] = x[r, (j*factor + f) // up]
    rt, t_in = x_ref.shape
    rout, t_out = o_ref.shape
    x = x_ref[...]

    if factor % up == 0:
        # out[r*F + u*U + s, j] = x[r, j*k + u],  k = F // U, s in [0, U).
        # Deinterleave lanes by k on the un-expanded input, then duplicate each
        # deinterleaved row `up` times along sublanes; single dense store.
        k = factor // up                                   # t_in == t_out * k
        z = x.reshape(rt, t_out, k)
        z = jnp.transpose(z, (0, 2, 1))                    # (rt, k, t_out)
        z = jnp.broadcast_to(z[:, :, None, :], (rt, k, up, t_out))
        o_ref[...] = z.reshape(rout, t_out)
    elif up % factor == 0:
        # out[r*F + f, j] = x[r, j // m] independent of f,  m = U // F.
        # Pure lane/sublane broadcast; no U-times expanded intermediate.
        m = up // factor                                   # t_out == t_in * m
        xr = jnp.broadcast_to(x[:, :, None], (rt, t_in, m)).reshape(rt, t_out)
        o_ref[...] = jnp.broadcast_to(
            xr[:, None, :], (rt, factor, t_out)).reshape(rout, t_out)
    else:
        # General path: literal duplicate-upsample followed by the squeeze
        # view / permute (any up, factor with factor | t_in*up).
        ups = jnp.broadcast_to(x[:, :, None], (rt, t_in, up)).reshape(rt, t_in * up)
        y = ups.reshape(rt, t_out, factor)
        y = jnp.transpose(y, (0, 2, 1))                    # (rt, factor, t_out)
        o_ref[...] = y.reshape(rout, t_out)


def _vmem_budget_and_limit():
    """Generation-aware VMEM budget for the tile chooser and the compiler limit."""
    try:
        phys = pltpu.get_tpu_info().vmem_capacity_bytes
    except Exception:
        phys = 64 * 1024 * 1024  # be conservative (v7x-sized) if the query fails
    if phys >= 128 * 1024 * 1024:                 # v5e / v6e: 128 MiB physical VMEM
        return 48 * 1024 * 1024, 80 * 1024 * 1024
    return 20 * 1024 * 1024, 32 * 1024 * 1024     # v7x: 64 MiB physical VMEM


def _choose_row_tile(rows, itemsize, max_rows=64):
    """Largest row tile (<= max_rows) that divides rows and is a multiple of the
    sublane group for this dtype; falls back to the full row extent."""
    sub = {4: 8, 2: 16, 1: 32}.get(itemsize, 8)
    for group in (sub, 8):
        cands = [r for r in range(group, min(rows, max_rows) + 1, group)
                 if rows % r == 0]
        if cands:
            return max(cands)
    return rows   # full extent is always a legal block dim


def _choose_lane_tile(lout, t_full, row_steps, rt, up, factor, itemsize,
                      budget_bytes, max_tile=8192):
    """Largest multiple-of-128 divisor of lout whose input tile stays lane-aligned,
    whose VMEM footprint (incl. in-kernel temporaries) fits the budget, preferring
    tiles that leave >= 2 total grid steps. Falls back to the full length."""
    def fits(t_out):
        if (t_out * factor) % up:
            return False
        t_in = t_out * factor // up
        if t_in % 128 and t_in != t_full:
            return False
        in_b = rt * t_in * itemsize
        out_b = rt * factor * t_out * itemsize
        # Bound the un-expanded tile (and hence any Mosaic relayout temporaries
        # of it) and the expanded/broadcast intermediates explicitly.
        if in_b > 512 * 1024 or up * in_b > 4 * 1024 * 1024:
            return False
        # double-buffered in/out blocks + broadcast/transpose temporaries
        est = 2 * (in_b + out_b) + up * in_b + 2 * out_b
        return est <= budget_bytes

    cands = [d for d in range(128, min(lout, max_tile) + 1, 128)
             if lout % d == 0 and fits(d)]
    if not cands:
        return lout
    multi = [d for d in cands if row_steps * (lout // d) >= 2]
    return max(multi) if multi else max(cands)


def upsample_net_forward(x, upsample_factor=4, squeeze_factor=8):
    """x: (B, C, T). Returns (B, C*squeeze_factor, T*upsample_factor//squeeze_factor)."""
    if isinstance(upsample_factor, (list, tuple)):
        up = int(math.prod(upsample_factor))   # matches int(np.prod(...)) in the module
    else:
        up = int(upsample_factor)
    factor = int(squeeze_factor)

    B, C, T = x.shape
    L = T * up
    assert L % factor == 0, "upsampled length must be divisible by squeeze factor"
    lout = L // factor
    rows = B * C
    itemsize = jnp.dtype(x.dtype).itemsize

    budget, vmem_limit = _vmem_budget_and_limit()
    rt = _choose_row_tile(rows, itemsize)
    row_steps = rows // rt
    t_out = _choose_lane_tile(lout, T, row_steps, rt, up, factor, itemsize, budget)
    assert lout % t_out == 0 and (t_out * factor) % up == 0
    t_in = t_out * factor // up
    grid = (row_steps, lout // t_out)

    kernel = functools.partial(_upsample_squeeze_kernel, up=up, factor=factor)
    cost = pl.CostEstimate(
        flops=0,
        transcendentals=0,
        bytes_accessed=int((1 + up) * rows * T * itemsize),
    )

    out2d = pl.pallas_call(
        kernel,
        out_shape=jax.ShapeDtypeStruct((rows * factor, lout), x.dtype),
        grid=grid,
        in_specs=[pl.BlockSpec((rt, t_in), lambda i, l: (i, l))],
        out_specs=pl.BlockSpec((rt * factor, t_out), lambda i, l: (i, l)),
        compiler_params=pltpu.CompilerParams(
            dimension_semantics=("parallel", "parallel"),
            vmem_limit_bytes=vmem_limit,
        ),
        cost_estimate=cost,
    )(x.reshape(rows, T))

    return out2d.reshape(B, C * factor, lout)


def _reference(x, up, factor):
    """Pure-JAX reference of the PyTorch forward pass."""
    B, C, T = x.shape
    lout = T * up // factor
    ref = jnp.repeat(x, up, axis=-1)             # nearest ('duplicate') upsample
    ref = ref.reshape(B, C, lout, factor)        # SqueezeLayer view
    ref = jnp.transpose(ref, (0, 1, 3, 2))       # permute(0, 1, 3, 2)
    return ref.reshape(B, C * factor, lout)      # final view


if __name__ == "__main__":
    key = jax.random.PRNGKey(0)
    # (B, C, T, upsample_factor, squeeze_factor)
    cases = [
        (2, 4, 768, 4, 8),   # fast path (F % U == 0), multiple lane tiles
        (2, 4, 16, 4, 8),    # tiny shape -> full-block fallback (Lout = 8)
        (1, 4, 64, 16, 8),   # up % F == 0 broadcast path
    ]
    for i, (B, C, T, up, sq) in enumerate(cases):
        key, sub = jax.random.split(key)
        x = jax.random.normal(sub, (B, C, T), dtype=jnp.float32)
        out = jax.block_until_ready(upsample_net_forward(x, up, sq))
        ref = _reference(x, up, sq)
        assert out.shape == ref.shape, (out.shape, ref.shape)
        assert jnp.array_equal(out, ref), f"Pallas output mismatch vs reference (case {i})"

    print("KERNEL_OK")
</pallas_src>

<mosaic_0001>
module attributes {stable_mosaic.version = 11 : i64} {
  func.func @_upsample_squeeze_kernel(%arg0: i32, %arg1: i32, %arg2: memref<8x256xf32, #tpu.memory_space<vmem>>, %arg3: memref<64x128xf32, #tpu.memory_space<vmem>>) attributes {dimension_semantics = [#tpu.dimension_semantics<parallel>, #tpu.dimension_semantics<parallel>], iteration_bounds = array<i64: 1, 3>, scalar_prefetch = 0 : i64, scratch_operands = 0 : i64, tpu.core_type = #tpu.core_type<tc>, window_params = [{transform_indices = @transform_0, window_bounds = array<i64: 8, 256>}, {transform_indices = @transform_1, window_bounds = array<i64: 64, 128>}]} {
    %c0 = arith.constant 0 : index
    %c0_0 = arith.constant 0 : index
    %0 = vector.load %arg2[%c0, %c0_0] : memref<8x256xf32, #tpu.memory_space<vmem>>, vector<8x256xf32>
    %1 = vector.shape_cast %0 : vector<8x256xf32> to vector<8x128x2xf32>
    %2 = tpu.transpose %1, [0, 2, 1] : vector<8x128x2xf32> -> vector<8x2x128xf32>
    %3 = vector.shape_cast %2 : vector<8x2x128xf32> to vector<8x2x1x128xf32>
    %4 = vector.shape_cast %3 : vector<8x2x1x128xf32> to vector<8x2x1x128xf32>
    %5 = vector.broadcast %4 : vector<8x2x1x128xf32> to vector<8x2x4x128xf32>
    %6 = vector.shape_cast %5 : vector<8x2x4x128xf32> to vector<64x128xf32>
    %c0_1 = arith.constant 0 : index
    %c0_2 = arith.constant 0 : index
    %7 = vector.load %arg3[%c0_1, %c0_2] : memref<64x128xf32, #tpu.memory_space<vmem>>, vector<64x128xf32>
    tpu.vector_store %arg3[%c0_1, %c0_2], %6 {strides = array<i32>} : memref<64x128xf32, #tpu.memory_space<vmem>>, vector<64x128xf32>,
    return
  }
  func.func @transform_0(%arg0: i32, %arg1: i32) -> (i32, i32) {
    %c0_i32 = arith.constant 0 : i32
    return %arg0, %arg1 : i32, i32
  }
  func.func @transform_1(%arg0: i32, %arg1: i32) -> (i32, i32) {
    %c0_i32 = arith.constant 0 : i32
    return %arg0, %arg1 : i32, i32
  }
}

</mosaic_0001>

<bundles_post_ra>
// kernel: tpu_custom_call.1
= control target key start
LH: loop header
LB: loop body
LE: loop exit
PB: predicated region body
PF: predicated region fallthrough
CT: control target
= control target key end

     0   :  { %6 = vsyncpa [#allocation3], 0  ;;  %s4761_s0 = inlined_call_operand.hbm [shape: f32[8,768], index: 0, kind: input, shape index: {}]   ;;  %s4762_s1 = inlined_call_operand.hbm [shape: f32[64,384], index: 1, kind: output, shape index: {}]  }
   0x1   :  { %8 = vsyncpa [#allocation3 + $0x1], 0 }
   0x2   :  { %9 = vsyncpa [#allocation4], 0 }
   0x3   :  { %11 = vsyncpa [#allocation4 + $0x1], 0  ;;  %s3105_s6 = smov 0   ;;  %s3107_s7 = smov 0  }
   0x4   :  { %s3109_s8 = smov 0   ;;  %s3111_s9 = smov 0  }
   0x5   :  { %s3113_s10 = smov 0   ;;  %s3115_s11 = smov 0  }
   0x6 LB: > { %s2769_s12 = sadd.s32 4294967295, %s3026_s11   ;;  %s2770_s13 = sadd.s32 4294967294, %s3026_s11   ;;  %s3026_s11 = sphi %s3115_s11, %s17_s11   ;;  %s3022_s10 = sphi %s3113_s10, %s4988_s10   ;;  %s3018_s9 = sphi %s3111_s9, %s4987_s9   ;;  %s3014_s8 = sphi %s3109_s8, %s4986_s8   ;;  %s3010_s7 = sphi %s3107_s7, %s4985_s7   ;;  %s3006_s6 = sphi %s3105_s6, %s4984_s6  }
   0x7   : > { %s26_s14 = sadd.s32 1, %s3022_s10  ;;  %s38_s15 = sadd.s32 1, %s3014_s8 }
   0x8   : > { %p27_p0 = scmp.ge.s32.totalorder %s26_s14, 3  ;;  %p45_p1 = scmp.ne.s32.totalorder %s3014_s8, %s3010_s7 }
   0x9   : > { %p46_p2 = scmp.eq.s32.totalorder %s3026_s11, 0  ;;  %p51_p3 = scmp.ne.s32.totalorder %s3010_s7, %s3006_s6 }
   0xa   : > { %s4990_s14 = smov (%p27_p0, %s26_s14), 0  ;;  %p52_p5 = scmp.eq.s32.totalorder %s2769_s12, 0 }
   0xb   : > { %p3146_p4 = por %p46_p2, %p45_p1  ;;  %s34_s17 = ssub.s32 %s3022_s10, %s4990_s14 }
   0xc   : > { %p77_p6 = scmp.eq.s32.totalorder %s2769_s12, 2  ;;  %p36_p7 = scmp.eq.s32.totalorder %s34_s17, 0 }
   0xd   : > { %p3152_p8 = por %p52_p5, %p51_p3  ;;  %p83_p10 = scmp.eq.s32.totalorder %s2770_s13, 2 }
   0xe   : > { %p3156_p9 = por %p77_p6, %p45_p1  ;;  %p2796_p12 = scmp.lt.s32.totalorder %s3026_s11, 3 }
   0xf   : > { %s3161_s20 = scalar_select %p36_p7, %s3014_s8, %s38_s15  }
  0x10   : > { %p3163_p11 = por %p83_p10, %p51_p3  ;;  %s103_s22 = sand.u32 1, %s3014_s8  }
  0x11   : > { %s2773_s23 = sshll.u32 %s103_s22, 4  ;;  %s2783_s24 = sshll.u32 %s3022_s10, 4 }
  0x12   : > { %s114_s27 = scalar_lea.hbm %s4761_s0, %s2783_s24  ;;  %s107_s28 = scalar_lea.vmem [#allocation2], %s2773_s23 }
  0x13   : > { %s118_s29 = sshll.u32 %s107_s28, 4  ;;  %s116_s30 = sshll.u32 %s114_s27, 4  ;;  %s119_s29 = int_to_ptr.vmem [resolvable:$true] %s118_s29  ;;  %s117_s30 = int_to_ptr.hbm [resolvable:$true] %s116_s30 }
  0x14   : > { %p2789_p13 = pnand %p2796_p12, %p3146_p4  ;;  %p2776_p0 = scmp.ge.s32.totalorder %s3026_s11, 1 }
  0x15   : > { %p123_p1 = scmp.lt.s32.totalorder %s3026_s11, 4  ;;  %s104_s2 = scalar_lea.sflag [#allocation3], %s103_s22 }
  0x16   : > { %2791 = dma.hbm_to_vmem [thread:$0]  (!%p2789_p13), %s117_s30, 256, %s119_s29, %s104_s2  }
  0x17   : > { %p124_p2 = pnand %p2776_p0, %p123_p1 }
  0x19   : > { %127 = sbr.rel (%p124_p2) target bundleno = 836 (0x344), region = 24 }
  0x1e   : > { %s3178_s3 = sand.u32 1, %s3010_s7  }
  0x1f   : > { %s2777_s4 = sshll.u32 %s3178_s3, 4  ;;  %s130_s5 = scalar_lea.sflag [#allocation3], %s3178_s3 }
  0x20   : > { %s3182_s12 = scalar_lea.vmem [#allocation2], %s2777_s4 }
  0x21   : > { %2997 = dma.done.wait (%p3152_p8), %s130_s5, 256  }
  0x22   : > { %2999 = vsyncadd (%p3152_p8), %s130_s5, 4294967040  ;;  %v3189_v0 = vld [vmem:[%s3182_s12] sm:$0xff]  ;;  %s3028_s13 = smov 118   ;;  %s3029_s15 = smov 122   ;;  %v3073_v4 = vmov 1983009808  }
  0x23   : > { %170 = vrot.lane.b32.xlu2 %v3189_v0, %s3028_s13  ;;  %164 = vrot.lane.b32.xlu1 %v3189_v0, %s3029_s15  ;;  %s3030_s16 = smov 126   ;;  %s3031_s17 = smov 116   ;;  %v543_v5 = vunpack.c.l.s4 %v3073_v4  ;;  %vm538_vm0 = vcmask 1047556   ;;  %v540_v14 = vrot.slane %v3189_v0, 4  ;;  %v3077_v25 = vmov 1934713408  }
  0x24   : > { %158 = vrot.lane.b32.xlu0 %v3189_v0, %s3030_s16  ;;  %s3032_s18 = smov 120   ;;  %s3033_s22 = smov 124   ;;  %v591_v26 = vunpack.c.l.s4 %v3077_v25 }
  0x25   : > { %s3034_s23 = smov 110   ;;  %s3035_s24 = smov 112   ;;  %v3287_v11 = vunpack.c.0.s8 %v543_v5 }
  0x26   : > { %s3036_s25 = smov 114   ;;  %s3037_s26 = smov 104   ;;  %v3314_v35 = vunpack.c.0.s8 %v591_v26 }
  0x27   : > { %s3038_s27 = smov 106   ;;  %s4763_s28 = smov 108  }
  0x28   : > { %s4764_s29 = smov 98   ;;  %s4765_s30 = smov 100  }
  0x29   : > { %s4766_s2 = smov 102   ;;  %s4767_s4 = smov 92  }
  0x2a   : > { %s4768_s5 = smov 94  }
  0x2b   : > { %173 = vrot.lane.b32.xlu2 %v3189_v0, %s3031_s17  ;;  %167 = vrot.lane.b32.xlu1 %v3189_v0, %s3032_s18 }
  0x2c   : > { %161 = vrot.lane.b32.xlu0 %v3189_v0, %s3033_s22 }
  0x33   : > { %182 = vrot.lane.b32.xlu2 %v3189_v0, %s3034_s23  ;;  %179 = vrot.lane.b32.xlu1 %v3189_v0, %s3035_s24 }
  0x34   : > { %176 = vrot.lane.b32.xlu0 %v3189_v0, %s3036_s25 }
  0x3b   : > { %191 = vrot.lane.b32.xlu2 %v3189_v0, %s3037_s26  ;;  %188 = vrot.lane.b32.xlu1 %v3189_v0, %s3038_s27 }
  0x3c   : > { %185 = vrot.lane.b32.xlu0 %v3189_v0, %s4763_s28  ;;  %s4769_s28 = smov 96  }
  0x43   : > { %200 = vrot.lane.b32.xlu2 %v3189_v0, %s4764_s29  ;;  %197 = vrot.lane.b32.xlu1 %v3189_v0, %s4765_s30  ;;  %s4770_s29 = smov 86   ;;  %s4771_s30 = smov 88  }
  0x44   : > { %194 = vrot.lane.b32.xlu0 %v3189_v0, %s4766_s2  ;;  %s4772_s2 = smov 90  }
  0x4b   : > { %209 = vrot.lane.b32.xlu2 %v3189_v0, %s4767_s4  ;;  %206 = vrot.lane.b32.xlu1 %v3189_v0, %s4768_s5  ;;  %s4773_s4 = smov 80   ;;  %s4774_s5 = smov 82  }
  0x4c   : > { %203 = vrot.lane.b32.xlu0 %v3189_v0, %s4769_s28  ;;  %s4775_s28 = smov 84  }
  0x53   : > { %218 = vrot.lane.b32.xlu2 %v3189_v0, %s4770_s29  ;;  %215 = vrot.lane.b32.xlu1 %v3189_v0, %s4771_s30  ;;  %s4776_s29 = smov 74   ;;  %s4777_s30 = smov 76  }
  0x54   : > { %212 = vrot.lane.b32.xlu0 %v3189_v0, %s4772_s2  ;;  %s4778_s2 = smov 78  }
  0x5b   : > { %227 = vrot.lane.b32.xlu2 %v3189_v0, %s4773_s4  ;;  %224 = vrot.lane.b32.xlu1 %v3189_v0, %s4774_s5  ;;  %s4779_s4 = smov 68   ;;  %s4780_s5 = smov 70  }
  0x5c   : > { %221 = vrot.lane.b32.xlu0 %v3189_v0, %s4775_s28  ;;  %s4781_s28 = smov 72  }
  0x63   : > { %236 = vrot.lane.b32.xlu2 %v3189_v0, %s4776_s29  ;;  %233 = vrot.lane.b32.xlu1 %v3189_v0, %s4777_s30  ;;  %s4782_s29 = smov 62   ;;  %s4783_s30 = smov 64  }
  0x64   : > { %230 = vrot.lane.b32.xlu0 %v3189_v0, %s4778_s2  ;;  %s4784_s2 = smov 66  }
  0x6b   : > { %245 = vrot.lane.b32.xlu2 %v3189_v0, %s4779_s4  ;;  %242 = vrot.lane.b32.xlu1 %v3189_v0, %s4780_s5  ;;  %s4787_s4 = smov 56   ;;  %s4785_s5 = smov 58  }
  0x6c   : > { %239 = vrot.lane.b32.xlu0 %v3189_v0, %s4781_s28  ;;  %s4786_s28 = smov 60  }
  0x73   : > { %254 = vrot.lane.b32.xlu2 %v3189_v0, %s4782_s29  ;;  %251 = vrot.lane.b32.xlu1 %v3189_v0, %s4783_s30  ;;  %s4790_s29 = smov 50   ;;  %s4788_s30 = smov 52  }
  0x74   : > { %248 = vrot.lane.b32.xlu0 %v3189_v0, %s4784_s2  ;;  %s4789_s2 = smov 54  }
  0x7b   : > { %263 = vrot.lane.b32.xlu2 %v3189_v0, %s4787_s4  ;;  %260 = vrot.lane.b32.xlu1 %v3189_v0, %s4785_s5  ;;  %s3067_s5 = smov 44   ;;  %s3069_s4 = smov 48  }
  0x7c   : > { %257 = vrot.lane.b32.xlu0 %v3189_v0, %s4786_s28  ;;  %s3068_s28 = smov 46  }
  0x7d   : > { %v3263_v1 = vpop.permute.xlu2 %170 }
  0x7e   : > { %v576_v40 = vrot.slane %v3263_v1, 4 }
  0x83   : > { %272 = vrot.lane.b32.xlu2 %v3189_v0, %s4790_s29  ;;  %269 = vrot.lane.b32.xlu1 %v3189_v0, %s4788_s30  ;;  %s4793_s30 = smov 38   ;;  %s4792_s29 = smov 42  }
  0x84   : > { %266 = vrot.lane.b32.xlu0 %v3189_v0, %s4789_s2  ;;  %s4791_s2 = smov 40  }
  0x85   : > { %v174_v2 = vpop.permute.xlu2 %173 }
  0x86   : > { %v562_v15 = vrot.slane %v174_v2, 4 }
  0x8b   : > { %281 = vrot.lane.b32.xlu2 %v3189_v0, %s3067_s5  ;;  %278 = vrot.lane.b32.xlu1 %v3189_v0, %s3068_s28 }
  0x8c   : > { %275 = vrot.lane.b32.xlu0 %v3189_v0, %s3069_s4 }
  0x8d   : > { %v3277_v3 = vpop.permute.xlu2 %182 }
  0x8e   : > { %v664_v53 = vrot.slane %v3277_v3, 4 }
  0x93   : > { %290 = vrot.lane.b32.xlu2 %v3189_v0, %s4793_s30  ;;  %287 = vrot.lane.b32.xlu1 %v3189_v0, %s4791_s2  ;;  %s4796_s2 = smov 32   ;;  %s4794_s30 = smov 36  }
  0x94   : > { %284 = vrot.lane.b32.xlu0 %v3189_v0, %s4792_s29  ;;  %s4795_s29 = smov 34  }
  0x95   : > { %v165_v6 = vpop.permute.xlu1 %164  ;;  %v3285_v7 = vpop.permute.xlu2 %191 }
  0x96   : > { %v550_v8 = vrot.slane %v165_v6, 4  ;;  %v159_v9 = vpop.permute.xlu0 %158 }
  0x97   : > { %v552_v10 = vrot.slane %v159_v9, 4 }
  0x98   : > { %v551_v12 = vsel %vm538_vm0, %v550_v8, %v159_v9 }
  0x99   : > { %v553_v13 = vsel %vm538_vm0, %v165_v6, %v552_v10  ;;  %v557_v19 = vperm.slane %v551_v12, %v3287_v11 }
  0x9a   : > { %v561_v16 = vperm.slane %v553_v13, %v3287_v11 }
  0x9b   : > { %299 = vrot.lane.b32.xlu2 %v3189_v0, %s4796_s2  ;;  %296 = vrot.lane.b32.xlu1 %v3189_v0, %s4795_s29  ;;  %v586_v31 = vrot.slane %v557_v19, 4  ;;  %s4798_s29 = smov 28   ;;  %s4797_s2 = smov 30  }
  0x9c   : > { %293 = vrot.lane.b32.xlu0 %v3189_v0, %s4794_s30  ;;  %v598_v27 = vrot.slane %v561_v16, 4  ;;  %s4799_s30 = smov 26  }
  0x9d   : > { %v168_v17 = vpop.permute.xlu1 %167  ;;  %v3299_v18 = vpop.permute.xlu2 %200 }
  0x9e   : > { %v563_v20 = vsel %vm538_vm0, %v562_v15, %v168_v17  ;;  %v564_v21 = vrot.slane %v168_v17, 4  ;;  %v162_v22 = vpop.permute.xlu0 %161 }
  0x9f   : > { %v537_v23 = vrot.slane %v162_v22, 4  ;;  %v541_v24 = vsel %vm538_vm0, %v162_v22, %v540_v14  ;;  %v569_v43 = vperm.slane %v563_v20, %v3287_v11 }
  0xa0   : > { %v565_v28 = vsel %vm538_vm0, %v174_v2, %v564_v21  ;;  %v549_v29 = vperm.slane %v541_v24, %v3287_v11 }
  0xa1   : > { %v539_v30 = vsel %vm538_vm0, %v537_v23, %v3189_v0  ;;  %v573_v36 = vperm.slane %v565_v28, %v3287_v11  ;;  %v612_v56 = vrot.slane %v569_v43, 4 }
  0xa2   : > { %v545_v32 = vperm.slane %v539_v30, %v3287_v11  ;;  %v600_v33 = vrot.slane %v549_v29, 4  ;;  %v599_v34 = vsel %vm538_vm0, %v598_v27, %v549_v29 }
  0xa3   : > { %308 = vrot.lane.b32.xlu2 %v3189_v0, %s4799_s30  ;;  %305 = vrot.lane.b32.xlu1 %v3189_v0, %s4798_s29  ;;  %v3328_v48 = vperm.slane %v599_v34, %v3314_v35  ;;  %v624_v50 = vrot.slane %v573_v36, 4  ;;  %s4801_s29 = smov 22   ;;  %s4800_s30 = smov 24  }
  0xa4   : > { %v588_v37 = vrot.slane %v545_v32, 4  ;;  %302 = vrot.lane.b32.xlu0 %v3189_v0, %s4797_s2  ;;  %v587_v38 = vsel %vm538_vm0, %v586_v31, %v545_v32  ;;  %v601_v39 = vsel %vm538_vm0, %v561_v16, %v600_v33  ;;  %s4802_s2 = smov 20  }
  0xa5   : > { %v180_v41 = vpop.permute.xlu1 %179  ;;  %v3322_v42 = vpop.permute.xlu2 %209  ;;  %v3331_v49 = vperm.slane %v601_v39, %v3314_v35  ;;  %v593_v52 = vperm.slane %v587_v38, %v3314_v35  ;;  %v644_v61 = vrot.slane %v3328_v48, 4 }
  0xa6   : > { %v177_v44 = vpop.permute.xlu0 %176  ;;  %v589_v45 = vsel %vm538_vm0, %v557_v19, %v588_v37  ;;  %v652_v60 = vrot.slane %v180_v41, 4 }
  0xa7   : > { %v574_v46 = vrot.slane %v177_v44, 4  ;;  %v577_v47 = vsel %vm538_vm0, %v177_v44, %v576_v40  ;;  %v597_v55 = vperm.slane %v589_v45, %v3314_v35  ;;  %v648_v63 = vrot.slane %v3331_v49, 4 }
  0xa8   : > { %v585_v51 = vperm.slane %v577_v47, %v3287_v11  ;;  %v636_v4 = vrot.slane %v593_v52, 4  ;;  %v676_v40 = vrot.slane %v3285_v7, 4  ;;  %v686_v45 = vrot.slane %v3299_v18, 4 }
  0xa9   : > { %v575_v54 = vsel %vm538_vm0, %v574_v46, %v3263_v1  ;;  %v640_v10 = vrot.slane %v597_v55, 4 }
  0xaa   : > { %v581_v57 = vperm.slane %v575_v54, %v3287_v11  ;;  %v622_v58 = vrot.slane %v585_v51, 4  ;;  %v625_v59 = vsel %vm538_vm0, %v585_v51, %v624_v50 }
  0xab   : > { %317 = vrot.lane.b32.xlu2 %v3189_v0, %s4802_s2  ;;  %314 = vrot.lane.b32.xlu1 %v3189_v0, %s4801_s29  ;;  %v633_v62 = vperm.slane %v625_v59, %v3314_v35  ;;  %s4804_s29 = smov 16   ;;  %s4803_s2 = smov 18  }
  0xac   : > { %v610_v1 = vrot.slane %v581_v57, 4  ;;  %311 = vrot.lane.b32.xlu0 %v3189_v0, %s4800_s30  ;;  %v613_v2 = vsel %vm538_vm0, %v581_v57, %v612_v56  ;;  %v623_v5 = vsel %vm538_vm0, %v622_v58, %v573_v36  ;;  %s4805_s30 = smov 14  }
  0xad   : > { %v189_v6 = vpop.permute.xlu1 %188  ;;  %v3352_v8 = vpop.permute.xlu2 %218  ;;  %v621_v9 = vperm.slane %v613_v2, %v3314_v35  ;;  %v629_v12 = vperm.slane %v623_v5, %v3314_v35  ;;  %v3357_v13 = vsel %vm538_vm0, %v633_v62, %v648_v63  ;;  %v646_v19 = vrot.slane %v633_v62, 4 }
  0xae   : > { %4814 = vst [vmem:[#allocation8_spill] sm:$0xff] %v3357_v13  ;;  %v662_v14 = vrot.slane %v189_v6, 4  ;;  %v665_v15 = vsel %vm538_vm0, %v189_v6, %v664_v53  ;;  %v186_v16 = vpop.permute.xlu0 %185  ;;  %v611_v17 = vsel %vm538_vm0, %v610_v1, %v569_v43  ;;  %v762_v6 = vrot.slane %v3322_v42, 4 }
  0xaf   : > { %v673_v20 = vperm.slane %v665_v15, %v3287_v11  ;;  %v650_v21 = vrot.slane %v186_v16, 4  ;;  %v653_v22 = vsel %vm538_vm0, %v186_v16, %v652_v60  ;;  %v617_v23 = vperm.slane %v611_v17, %v3314_v35 }
  0xb0   : > { %v663_v24 = vsel %vm538_vm0, %v662_v14, %v3277_v3  ;;  %v661_v25 = vperm.slane %v653_v22, %v3287_v11  ;;  %v638_v26 = vrot.slane %v621_v9, 4  ;;  %v3368_v27 = vsel %vm538_vm0, %v621_v9, %v640_v10 }
  0xb1   : > { %4815 = vst [vmem:[#allocation9_spill] sm:$0xff] %v3368_v27  ;;  %v669_v28 = vperm.slane %v663_v24, %v3287_v11  ;;  %v710_v29 = vrot.slane %v673_v20, 4  ;;  %v651_v30 = vsel %vm538_vm0, %v650_v21, %v180_v41  ;;  %v634_v31 = vrot.slane %v617_v23, 4 }
  0xb2   : > { %v657_v32 = vperm.slane %v651_v30, %v3287_v11  ;;  %v712_v33 = vrot.slane %v661_v25, 4  ;;  %v3374_v34 = vsel %vm538_vm0, %v638_v26, %v597_v55  ;;  %v3377_v3 = vsel %vm538_vm0, %v617_v23, %v636_v4 }
  0xb3   : > { %v698_v36 = vrot.slane %v669_v28, 4  ;;  %326 = vrot.lane.b32.xlu2 %v3189_v0, %s4805_s30  ;;  %323 = vrot.lane.b32.xlu1 %v3189_v0, %s4804_s29  ;;  %v3384_v37 = vsel %vm538_vm0, %v634_v31, %v593_v52  ;;  %v642_v38 = vrot.slane %v629_v12, 4  ;;  %v711_v39 = vsel %vm538_vm0, %v710_v29, %v661_v25  ;;  %s4807_s29 = smov 10   ;;  %s4806_s30 = smov 12  }
  0xb4   : > { %v700_v41 = vrot.slane %v657_v32, 4  ;;  %320 = vrot.lane.b32.xlu0 %v3189_v0, %s4803_s2  ;;  %v3391_v43 = vsel %vm538_vm0, %v629_v12, %v644_v61  ;;  %v3395_v44 = vsel %vm538_vm0, %v646_v19, %v3331_v49  ;;  %v713_v52 = vsel %vm538_vm0, %v673_v20, %v712_v33  ;;  %s4808_s2 = smov 8  }
  0xb5   : > { %4816 = vst [vmem:[#allocation10_spill] sm:$0xff] %v3391_v43  ;;  %v198_v46 = vpop.permute.xlu1 %197  ;;  %v3398_v47 = vpop.permute.xlu2 %227  ;;  %v699_v50 = vsel %vm538_vm0, %v698_v36, %v657_v32  ;;  %v3403_v51 = vsel %vm538_vm0, %v642_v38, %v3328_v48  ;;  %v721_v5 = vperm.slane %v713_v52, %v3314_v35  ;;  %v717_v10 = vperm.slane %v711_v39, %v3314_v35 }
  0xb6   : > { %4817 = vst [vmem:[#allocation11_spill] sm:$0xff] %v3395_v44  ;;  %v674_v53 = vrot.slane %v198_v46, 4  ;;  %v677_v54 = vsel %vm538_vm0, %v198_v46, %v676_v40  ;;  %v195_v55 = vpop.permute.xlu0 %194  ;;  %v701_v58 = vsel %vm538_vm0, %v669_v28, %v700_v41  ;;  %v705_v63 = vperm.slane %v699_v50, %v3314_v35 }
  0xb7   : > { %4818 = vst [vmem:[#allocation12_spill] sm:$0xff] %v3403_v51  ;;  %v685_v49 = vperm.slane %v677_v54, %v3287_v11  ;;  %v687_v56 = vsel %vm538_vm0, %v686_v45, %v195_v55  ;;  %v688_v57 = vrot.slane %v195_v55, 4  ;;  %v709_v4 = vperm.slane %v701_v58, %v3314_v35 }
  0xb8   : > { %v675_v59 = vsel %vm538_vm0, %v674_v53, %v3285_v7  ;;  %v693_v60 = vperm.slane %v687_v56, %v3287_v11  ;;  %v748_v19 = vrot.slane %v705_v63, 4  ;;  %v760_v25 = vrot.slane %v721_v5, 4 }
  0xb9   : > { %v681_v48 = vperm.slane %v675_v59, %v3287_v11  ;;  %v736_v61 = vrot.slane %v685_v49, 4  ;;  %v689_v62 = vsel %vm538_vm0, %v3299_v18, %v688_v57  ;;  %v752_v23 = vrot.slane %v709_v4, 4 }
  0xba   : > { %v697_v1 = vperm.slane %v689_v62, %v3287_v11  ;;  %v722_v2 = vrot.slane %v693_v60, 4  ;;  %v756_v36 = vrot.slane %v717_v10, 4 }
  0xbb   : > { %v724_v7 = vrot.slane %v681_v48, 4  ;;  %335 = vrot.lane.b32.xlu2 %v3189_v0, %s4808_s2  ;;  %332 = vrot.lane.b32.xlu1 %v3189_v0, %s4807_s29  ;;  %s3091_s29 = smov 4   ;;  %s3092_s2 = smov 6  }
  0xbc   : > { %v734_v18 = vrot.slane %v697_v1, 4  ;;  %329 = vrot.lane.b32.xlu0 %v3189_v0, %s4806_s30  ;;  %v723_v9 = vsel %vm538_vm0, %v722_v2, %v681_v48  ;;  %v737_v12 = vsel %vm538_vm0, %v697_v1, %v736_v61  ;;  %s3090_s30 = smov 2   ;;  %v3478_v61 = vld [vmem:[%s3182_s12 + $0x8] sm:$0xff] }
  0xbd   : > { %v725_v14 = vsel %vm538_vm0, %v693_v60, %v724_v7  ;;  %v207_v15 = vpop.permute.xlu1 %206  ;;  %v3431_v16 = vpop.permute.xlu2 %236  ;;  %v729_v17 = vperm.slane %v723_v9, %v3314_v35  ;;  %v745_v20 = vperm.slane %v737_v12, %v3314_v35 }
  0xbe   : > { %v204_v21 = vpop.permute.xlu0 %203  ;;  %v733_v22 = vperm.slane %v725_v14, %v3314_v35  ;;  %v735_v24 = vsel %vm538_vm0, %v734_v18, %v685_v49  ;;  %v776_v50 = vrot.slane %v207_v15, 4 }
  0xbf   : > { %v763_v26 = vsel %vm538_vm0, %v762_v6, %v204_v21  ;;  %v764_v28 = vrot.slane %v204_v21, 4  ;;  %v746_v29 = vrot.slane %v729_v17, 4  ;;  %v3439_v30 = vsel %vm538_vm0, %v729_v17, %v748_v19 }
  0xc0   : > { %v750_v31 = vrot.slane %v733_v22, 4  ;;  %v3442_v32 = vsel %vm538_vm0, %v733_v22, %v752_v23  ;;  %v741_v33 = vperm.slane %v735_v24, %v3314_v35  ;;  %v758_v40 = vrot.slane %v745_v20, 4 }
  0xc1   : > { %4819 = vst [vmem:[#allocation13_spill] sm:$0xff] %v3442_v32  ;;  %v765_v38 = vsel %vm538_vm0, %v3322_v42, %v764_v28  ;;  %v3448_v39 = vsel %vm538_vm0, %v746_v29, %v705_v63  ;;  %v3451_v41 = vsel %vm538_vm0, %v745_v20, %v760_v25  ;;  %v769_v56 = vperm.slane %v763_v26, %v3287_v11 }
  0xc2   : > { %4820 = vst [vmem:[#allocation14_spill] sm:$0xff] %v3451_v41  ;;  %v3454_v45 = vsel %vm538_vm0, %v750_v31, %v709_v4  ;;  %v754_v46 = vrot.slane %v741_v33, 4  ;;  %v3461_v42 = vsel %vm538_vm0, %v741_v33, %v756_v36  ;;  %v3464_v52 = vsel %vm538_vm0, %v758_v40, %v721_v5 }
  0xc3   : > { %344 = vrot.lane.b32.xlu2 %v3189_v0, %s3090_s30  ;;  %341 = vrot.lane.b32.xlu1 %v3189_v0, %s3091_s29  ;;  %4821 = vst [vmem:[#allocation15_spill] sm:$0xff] %v3461_v42  ;;  %v773_v53 = vperm.slane %v765_v38, %v3287_v11  ;;  %v800_v5 = vrot.slane %v3352_v8, 4  ;;  %v876_v40 = vrot.slane %v3398_v47, 4 }
  0xc4   : > { %4822 = vst [vmem:[#allocation16_spill] sm:$0xff] %v3464_v52  ;;  %338 = vrot.lane.b32.xlu0 %v3189_v0, %s3092_s2  ;;  %v3470_v54 = vsel %vm538_vm0, %v754_v46, %v717_v10  ;;  %v812_v0 = vrot.slane %v769_v56, 4 }
  0xc5   : > { %4823 = vst [vmem:[#allocation17_spill] sm:$0xff] %v3470_v54  ;;  %v216_v55 = vpop.permute.xlu1 %215  ;;  %v3472_v49 = vpop.permute.xlu2 %245  ;;  %v824_v60 = vrot.slane %v773_v53, 4 }
  0xc6   : > { %v213_v57 = vpop.permute.xlu0 %212  ;;  %v788_v4 = vrot.slane %v216_v55, 4 }
  0xc7   : > { %v774_v58 = vrot.slane %v213_v57, 4  ;;  %v777_v59 = vsel %vm538_vm0, %v213_v57, %v776_v50 }
  0xc8   : > { %v785_v48 = vperm.slane %v777_v59, %v3287_v11 }
  0xc9   : > { %v775_v62 = vsel %vm538_vm0, %v774_v58, %v207_v15 }
  0xca   : > { %v781_v63 = vperm.slane %v775_v62, %v3287_v11  ;;  %v822_v1 = vrot.slane %v785_v48, 4  ;;  %v825_v2 = vsel %vm538_vm0, %v785_v48, %v824_v60 }
  0xcb   : > { %354 = vrot.lane.b32.xlu2 %v3478_v61, %s3029_s15  ;;  %351 = vrot.lane.b32.xlu1 %v3478_v61, %s3033_s22  ;;  %v3499_v22 = vperm.slane %v825_v2, %v3314_v35  ;;  %s4830_s15 = smov 98   ;;  %s4836_s22 = smov 94  }
  0xcc   : > { %v810_v6 = vrot.slane %v781_v63, 4  ;;  %348 = vrot.lane.b32.xlu0 %v3478_v61, %s3030_s16  ;;  %v813_v7 = vsel %vm538_vm0, %v781_v63, %v812_v0  ;;  %v823_v18 = vsel %vm538_vm0, %v822_v1, %v773_v53  ;;  %s4831_s16 = smov 100  }
  0xcd   : > { %v225_v9 = vpop.permute.xlu1 %224  ;;  %v3492_v10 = vpop.permute.xlu2 %254  ;;  %v821_v25 = vperm.slane %v813_v7, %v3314_v35  ;;  %v829_v26 = vperm.slane %v823_v18, %v3314_v35  ;;  %v872_v57 = vrot.slane %v3499_v22, 4 }
  0xce   : > { %v798_v12 = vrot.slane %v225_v9, 4  ;;  %v801_v14 = vsel %vm538_vm0, %v225_v9, %v800_v5  ;;  %v222_v15 = vpop.permute.xlu0 %221  ;;  %v811_v17 = vsel %vm538_vm0, %v810_v6, %v769_v56 }
  0xcf   : > { %v809_v19 = vperm.slane %v801_v14, %v3287_v11  ;;  %v786_v20 = vrot.slane %v222_v15, 4  ;;  %v789_v21 = vsel %vm538_vm0, %v222_v15, %v788_v4  ;;  %v817_v33 = vperm.slane %v811_v17, %v3314_v35 }
  0xd0   : > { %v799_v23 = vsel %vm538_vm0, %v798_v12, %v3352_v8  ;;  %v797_v24 = vperm.slane %v789_v21, %v3287_v11  ;;  %v886_v8 = vrot.slane %v3431_v16, 4  ;;  %v868_v0 = vrot.slane %v829_v26, 4 }
  0xd1   : > { %v805_v28 = vperm.slane %v799_v23, %v3287_v11  ;;  %v846_v29 = vrot.slane %v809_v19, 4  ;;  %v787_v31 = vsel %vm538_vm0, %v786_v20, %v216_v55  ;;  %v864_v55 = vrot.slane %v821_v25, 4 }
  0xd2   : > { %v793_v36 = vperm.slane %v787_v31, %v3287_v11  ;;  %v848_v38 = vrot.slane %v797_v24, 4  ;;  %v860_v48 = vrot.slane %v817_v33, 4 }
  0xd3   : > { %v834_v46 = vrot.slane %v805_v28, 4  ;;  %v847_v50 = vsel %vm538_vm0, %v846_v29, %v797_v24  ;;  %363 = vrot.lane.b32.xlu2 %v3478_v61, %s3031_s17  ;;  %360 = vrot.lane.b32.xlu1 %v3478_v61, %s3028_s13  ;;  %s4829_s13 = smov 108   ;;  %s4832_s17 = smov 102  }
  0xd4   : > { %v836_v53 = vrot.slane %v793_v36, 4  ;;  %357 = vrot.lane.b32.xlu0 %v3478_v61, %s3032_s18  ;;  %v849_v56 = vsel %vm538_vm0, %v809_v19, %v848_v38  ;;  %v853_v62 = vperm.slane %v847_v50, %v3314_v35  ;;  %v898_v50 = vrot.slane %v3472_v49, 4  ;;  %s4835_s18 = smov 92  }
  0xd5   : > { %v234_v58 = vpop.permute.xlu1 %233  ;;  %v3521_v59 = vpop.permute.xlu2 %263  ;;  %v835_v60 = vsel %vm538_vm0, %v834_v46, %v793_v36  ;;  %v857_v5 = vperm.slane %v849_v56, %v3314_v35 }
  0xd6   : > { %v874_v63 = vrot.slane %v234_v58, 4  ;;  %v877_v1 = vsel %vm538_vm0, %v234_v58, %v876_v40  ;;  %v231_v2 = vpop.permute.xlu0 %230  ;;  %v841_v4 = vperm.slane %v835_v60, %v3314_v35  ;;  %v837_v9 = vsel %vm538_vm0, %v805_v28, %v836_v53 }
  0xd7   : > { %v885_v6 = vperm.slane %v877_v1, %v3287_v11  ;;  %v887_v7 = vsel %vm538_vm0, %v886_v8, %v231_v2  ;;  %v888_v18 = vrot.slane %v231_v2, 4  ;;  %v845_v17 = vperm.slane %v837_v9, %v3314_v35 }
  0xd8   : > { %v875_v12 = vsel %vm538_vm0, %v874_v63, %v3398_v47  ;;  %v893_v14 = vperm.slane %v887_v7, %v3287_v11  ;;  %v858_v15 = vrot.slane %v841_v4, 4  ;;  %v3539_v23 = vsel %vm538_vm0, %v841_v4, %v860_v48 }
  0xd9   : > { %v881_v19 = vperm.slane %v875_v12, %v3287_v11  ;;  %v936_v20 = vrot.slane %v885_v6, 4  ;;  %v889_v21 = vsel %vm538_vm0, %v3431_v16, %v888_v18  ;;  %v862_v47 = vrot.slane %v845_v17, 4 }
  0xda   : > { %v897_v24 = vperm.slane %v889_v21, %v3287_v11  ;;  %v922_v28 = vrot.slane %v893_v14, 4  ;;  %v3543_v29 = vsel %vm538_vm0, %v858_v15, %v817_v33  ;;  %v3550_v36 = vsel %vm538_vm0, %v845_v17, %v864_v55 }
  0xdb   : > { %v924_v31 = vrot.slane %v881_v19, 4  ;;  %372 = vrot.lane.b32.xlu2 %v3478_v61, %s3034_s23  ;;  %369 = vrot.lane.b32.xlu1 %v3478_v61, %s3035_s24  ;;  %4824 = vst [vmem:[#allocation18_spill] sm:$0xff] %v3550_v36  ;;  %v866_v16 = vrot.slane %v853_v62, 4  ;;  %v3553_v38 = vsel %vm538_vm0, %v853_v62, %v868_v0  ;;  %v3558_v33 = vsel %vm538_vm0, %v862_v47, %v821_v25  ;;  %s4837_s23 = smov 96   ;;  %s4841_s24 = smov 86  }
  0xdc   : > { %4825 = vst [vmem:[#allocation19_spill] sm:$0xff] %v3553_v38  ;;  %v934_v40 = vrot.slane %v897_v24, 4  ;;  %366 = vrot.lane.b32.xlu0 %v3478_v61, %s3036_s25  ;;  %v923_v8 = vsel %vm538_vm0, %v922_v28, %v881_v19  ;;  %v870_v46 = vrot.slane %v857_v5, 4  ;;  %v3569_v60 = vsel %vm538_vm0, %v857_v5, %v872_v57  ;;  %s4842_s25 = smov 88  }
  0xdd   : > { %v243_v53 = vpop.permute.xlu1 %242  ;;  %v3562_v56 = vpop.permute.xlu2 %272  ;;  %v925_v55 = vsel %vm538_vm0, %v893_v14, %v924_v31  ;;  %v3566_v58 = vsel %vm538_vm0, %v866_v16, %v829_v26  ;;  %4827 = vst [vmem:[#allocation21_spill] sm:$0xff] %v3569_v60  ;;  %v937_v1 = vsel %vm538_vm0, %v897_v24, %v936_v20  ;;  %v929_v18 = vperm.slane %v923_v8, %v3314_v35 }
  0xde   : > { %4826 = vst [vmem:[#allocation20_spill] sm:$0xff] %v3566_v58  ;;  %v240_v48 = vpop.permute.xlu0 %239  ;;  %v935_v25 = vsel %vm538_vm0, %v934_v40, %v885_v6  ;;  %v3575_v63 = vsel %vm538_vm0, %v870_v46, %v3499_v22  ;;  %v912_v26 = vrot.slane %v243_v53, 4  ;;  %v945_v9 = vperm.slane %v937_v1, %v3314_v35 }
  0xdf   : > { %v899_v62 = vsel %vm538_vm0, %v898_v50, %v240_v48  ;;  %v900_v0 = vrot.slane %v240_v48, 4  ;;  %4828 = vst [vmem:[#allocation22_spill] sm:$0xff] %v3575_v63  ;;  %v933_v15 = vperm.slane %v925_v55, %v3314_v35  ;;  %v1000_v17 = vrot.slane %v3492_v10, 4 }
  0xe0   : > { %v905_v5 = vperm.slane %v899_v62, %v3287_v11  ;;  %v941_v20 = vperm.slane %v935_v25, %v3314_v35  ;;  %v972_v16 = vrot.slane %v929_v18, 4  ;;  %v984_v8 = vrot.slane %v945_v9, 4 }
  0xe1   : > { %v901_v2 = vsel %vm538_vm0, %v3472_v49, %v900_v0 }
  0xe2   : > { %v909_v57 = vperm.slane %v901_v2, %v3287_v11  ;;  %v948_v21 = vrot.slane %v905_v5, 4  ;;  %v980_v1 = vrot.slane %v941_v20, 4 }
  0xe3   : > { %381 = vrot.lane.b32.xlu2 %v3478_v61, %s3037_s26  ;;  %378 = vrot.lane.b32.xlu1 %v3478_v61, %s3038_s27  ;;  %s4843_s26 = smov 90   ;;  %s4846_s27 = smov 80  }
  0xe4   : > { %375 = vrot.lane.b32.xlu0 %v3478_v61, %s4829_s13  ;;  %v960_v12 = vrot.slane %v909_v57, 4  ;;  %s4847_s13 = smov 82  }
  0xe5   : > { %v252_v4 = vpop.permute.xlu1 %251  ;;  %v3587_v22 = vpop.permute.xlu2 %281 }
  0xe6   : > { %v249_v6 = vpop.permute.xlu0 %248  ;;  %v988_v31 = vrot.slane %v252_v4, 4 }
  0xe7   : > { %v910_v7 = vrot.slane %v249_v6, 4  ;;  %v913_v49 = vsel %vm538_vm0, %v249_v6, %v912_v26 }
  0xe8   : > { %v921_v14 = vperm.slane %v913_v49, %v3287_v11 }
  0xe9   : > { %v911_v19 = vsel %vm538_vm0, %v910_v7, %v243_v53  ;;  %v976_v53 = vrot.slane %v933_v15, 4 }
  0xea   : > { %v917_v24 = vperm.slane %v911_v19, %v3287_v11  ;;  %v958_v28 = vrot.slane %v921_v14, 4  ;;  %v961_v47 = vsel %vm538_vm0, %v921_v14, %v960_v12 }
  0xeb   : > { %390 = vrot.lane.b32.xlu2 %v3478_v61, %s4830_s15  ;;  %387 = vrot.lane.b32.xlu1 %v3478_v61, %s4831_s16  ;;  %v969_v40 = vperm.slane %v961_v47, %v3314_v35  ;;  %s4850_s15 = smov 84   ;;  %s4852_s16 = smov 74  }
  0xec   : > { %v946_v46 = vrot.slane %v917_v24, 4  ;;  %384 = vrot.lane.b32.xlu0 %v3478_v61, %s4832_s17  ;;  %v949_v50 = vsel %vm538_vm0, %v917_v24, %v948_v21  ;;  %v959_v55 = vsel %vm538_vm0, %v958_v28, %v909_v57  ;;  %s4853_s17 = smov 76  }
  0xed   : > { %v261_v48 = vpop.permute.xlu1 %260  ;;  %v3609_v25 = vpop.permute.xlu2 %290  ;;  %v957_v62 = vperm.slane %v949_v50, %v3314_v35  ;;  %v965_v0 = vperm.slane %v959_v55, %v3314_v35  ;;  %v3614_v2 = vsel %vm538_vm0, %v969_v40, %v984_v8  ;;  %v982_v12 = vrot.slane %v969_v40, 4 }
  0xee   : > { %4833 = vst [vmem:[#allocation23_spill] sm:$0xff] %v3614_v2  ;;  %v998_v26 = vrot.slane %v261_v48, 4  ;;  %v1001_v6 = vsel %vm538_vm0, %v261_v48, %v1000_v17  ;;  %v258_v7 = vpop.permute.xlu0 %257  ;;  %v947_v49 = vsel %vm538_vm0, %v946_v46, %v905_v5 }
  0xef   : > { %v1009_v57 = vperm.slane %v1001_v6, %v3287_v11  ;;  %v986_v14 = vrot.slane %v258_v7, 4  ;;  %v989_v19 = vsel %vm538_vm0, %v258_v7, %v988_v31  ;;  %v953_v21 = vperm.slane %v947_v49, %v3314_v35 }
  0xf0   : > { %v999_v24 = vsel %vm538_vm0, %v998_v26, %v3492_v10  ;;  %v997_v28 = vperm.slane %v989_v19, %v3287_v11  ;;  %v974_v47 = vrot.slane %v957_v62, 4  ;;  %v3625_v8 = vsel %vm538_vm0, %v957_v62, %v976_v53 }
  0xf1   : > { %4834 = vst [vmem:[#allocation24_spill] sm:$0xff] %v3625_v8  ;;  %v1005_v17 = vperm.slane %v999_v24, %v3287_v11  ;;  %v1046_v5 = vrot.slane %v1009_v57, 4  ;;  %v987_v40 = vsel %vm538_vm0, %v986_v14, %v252_v4  ;;  %v970_v46 = vrot.slane %v953_v21, 4 }
  0xf2   : > { %v993_v50 = vperm.slane %v987_v40, %v3287_v11  ;;  %v1048_v31 = vrot.slane %v997_v28, 4  ;;  %v3631_v55 = vsel %vm538_vm0, %v974_v47, %v933_v15  ;;  %v3634_v10 = vsel %vm538_vm0, %v953_v21, %v972_v16 }
  0xf3   : > { %v1034_v48 = vrot.slane %v1005_v17, 4  ;;  %399 = vrot.lane.b32.xlu2 %v3478_v61, %s4835_s18  ;;  %396 = vrot.lane.b32.xlu1 %v3478_v61, %s4836_s22  ;;  %v3641_v53 = vsel %vm538_vm0, %v970_v46, %v929_v18  ;;  %v978_v4 = vrot.slane %v965_v0, 4  ;;  %v1047_v62 = vsel %vm538_vm0, %v1046_v5, %v997_v28  ;;  %s4854_s18 = smov 78   ;;  %s4855_s22 = smov 68  }
  0xf4   : > { %v1012_v26 = vrot.slane %v3521_v59, 4  ;;  %v1036_v15 = vrot.slane %v993_v50, 4  ;;  %393 = vrot.lane.b32.xlu0 %v3478_v61, %s4837_s23  ;;  %v3648_v16 = vsel %vm538_vm0, %v965_v0, %v980_v1  ;;  %v3651_v6 = vsel %vm538_vm0, %v982_v12, %v945_v9  ;;  %s4856_s23 = smov 70  }
  0xf5   : > { %4838 = vst [vmem:[#allocation25_spill] sm:$0xff] %v3648_v16  ;;  %v1022_v7 = vrot.slane %v3562_v56, 4  ;;  %v270_v49 = vpop.permute.xlu1 %269  ;;  %v3654_v18 = vpop.permute.xlu2 %299  ;;  %v1035_v14 = vsel %vm538_vm0, %v1034_v48, %v993_v50  ;;  %v3658_v19 = vsel %vm538_vm0, %v978_v4, %v941_v20  ;;  %v1049_v21 = vsel %vm538_vm0, %v1009_v57, %v1048_v31 }
  0xf6   : > { %4839 = vst [vmem:[#allocation26_spill] sm:$0xff] %v3651_v6  ;;  %v1010_v24 = vrot.slane %v270_v49, 4  ;;  %v1013_v28 = vsel %vm538_vm0, %v270_v49, %v1012_v26  ;;  %v267_v0 = vpop.permute.xlu0 %266  ;;  %v1037_v47 = vsel %vm538_vm0, %v1005_v17, %v1036_v15  ;;  %v1041_v50 = vperm.slane %v1035_v14, %v3314_v35 }
  0xf7   : > { %4840 = vst [vmem:[#allocation27_spill] sm:$0xff] %v3658_v19  ;;  %v1021_v1 = vperm.slane %v1013_v28, %v3287_v11  ;;  %v1023_v9 = vsel %vm538_vm0, %v1022_v7, %v267_v0  ;;  %v1024_v12 = vrot.slane %v267_v0, 4  ;;  %v1045_v4 = vperm.slane %v1037_v47, %v3314_v35 }
  0xf8   : > { %v1011_v5 = vsel %vm538_vm0, %v1010_v24, %v3521_v59  ;;  %v1029_v40 = vperm.slane %v1023_v9, %v3287_v11  ;;  %v1057_v17 = vperm.slane %v1049_v21, %v3314_v35  ;;  %v1098_v26 = vrot.slane %v3587_v22, 4 }
  0xf9   : > { %v1017_v20 = vperm.slane %v1011_v5, %v3287_v11  ;;  %v1072_v46 = vrot.slane %v1021_v1, 4  ;;  %v1025_v57 = vsel %vm538_vm0, %v3562_v56, %v1024_v12  ;;  %v1053_v7 = vperm.slane %v1047_v62, %v3314_v35 }
  0xfa   : > { %v1033_v31 = vperm.slane %v1025_v57, %v3287_v11  ;;  %v1058_v48 = vrot.slane %v1029_v40, 4  ;;  %v1084_v0 = vrot.slane %v1041_v50, 4  ;;  %v1088_v5 = vrot.slane %v1045_v4, 4 }
  0xfb   : > { %v1060_v59 = vrot.slane %v1017_v20, 4  ;;  %408 = vrot.lane.b32.xlu2 %v3478_v61, %s4841_s24  ;;  %405 = vrot.lane.b32.xlu1 %v3478_v61, %s4842_s25  ;;  %v1096_v57 = vrot.slane %v1057_v17, 4  ;;  %s4857_s24 = smov 72   ;;  %s4858_s25 = smov 62  }
  0xfc   : > { %v1070_v15 = vrot.slane %v1033_v31, 4  ;;  %402 = vrot.lane.b32.xlu0 %v3478_v61, %s4843_s26  ;;  %v1059_v56 = vsel %vm538_vm0, %v1058_v48, %v1017_v20  ;;  %v1073_v49 = vsel %vm538_vm0, %v1033_v31, %v1072_v46  ;;  %s4859_s26 = smov 64  }
  0xfd   : > { %v1061_v14 = vsel %vm538_vm0, %v1029_v40, %v1060_v59  ;;  %v279_v21 = vpop.permute.xlu1 %278  ;;  %v3686_v24 = vpop.permute.xlu2 %308  ;;  %v1065_v28 = vperm.slane %v1059_v56, %v3314_v35  ;;  %v1081_v9 = vperm.slane %v1073_v49, %v3314_v35  ;;  %v1092_v49 = vrot.slane %v1053_v7, 4 }
  0xfe   : > { %v276_v12 = vpop.permute.xlu0 %275  ;;  %v1069_v47 = vperm.slane %v1061_v14, %v3314_v35  ;;  %v1071_v20 = vsel %vm538_vm0, %v1070_v15, %v1021_v1 }
  0xff   : > { %v1099_v62 = vsel %vm538_vm0, %v1098_v26, %v276_v12  ;;  %v1100_v46 = vrot.slane %v276_v12, 4  ;;  %v1082_v31 = vrot.slane %v1065_v28, 4  ;;  %v3694_v40 = vsel %vm538_vm0, %v1065_v28, %v1084_v0 }
 0x100   : > { %v1086_v48 = vrot.slane %v1069_v47, 4  ;;  %v3697_v59 = vsel %vm538_vm0, %v1069_v47, %v1088_v5  ;;  %v1077_v56 = vperm.slane %v1071_v20, %v3314_v35  ;;  %v1094_v15 = vrot.slane %v1081_v9, 4 }
 0x101   : > { %4844 = vst [vmem:[#allocation28_spill] sm:$0xff] %v3697_v59  ;;  %v1101_v14 = vsel %vm538_vm0, %v3587_v22, %v1100_v46  ;;  %v3703_v1 = vsel %vm538_vm0, %v1082_v31, %v1041_v50  ;;  %v3706_v26 = vsel %vm538_vm0, %v1081_v9, %v1096_v57  ;;  %v1112_v12 = vrot.slane %v279_v21, 4 }
 0x102   : > { %4845 = vst [vmem:[#allocation29_spill] sm:$0xff] %v3706_v26  ;;  %v3709_v28 = vsel %vm538_vm0, %v1086_v48, %v1045_v4  ;;  %v1090_v0 = vrot.slane %v1077_v56, 4  ;;  %v3716_v22 = vsel %vm538_vm0, %v1077_v56, %v1092_v49  ;;  %v3719_v50 = vsel %vm538_vm0, %v1094_v15, %v1057_v17 }
 0x103   : > { %417 = vrot.lane.b32.xlu2 %v3478_v61, %s4846_s27  ;;  %414 = vrot.lane.b32.xlu1 %v3478_v61, %s4847_s13  ;;  %4848 = vst [vmem:[#allocation30_spill] sm:$0xff] %v3716_v22  ;;  %v1109_v9 = vperm.slane %v1101_v14, %v3287_v11  ;;  %v1105_v20 = vperm.slane %v1099_v62, %v3287_v11  ;;  %v1136_v62 = vrot.slane %v3609_v25, 4  ;;  %s4862_s27 = smov 66   ;;  %s4866_s13 = smov 56  }
 0x104   : > { %4849 = vst [vmem:[#allocation31_spill] sm:$0xff] %v3719_v50  ;;  %411 = vrot.lane.b32.xlu0 %v3478_v61, %s4850_s15  ;;  %v3725_v4 = vsel %vm538_vm0, %v1090_v0, %v1053_v7  ;;  %s4867_s15 = smov 58  }
 0x105   : > { %4851 = vst [vmem:[#allocation32_spill] sm:$0xff] %v3725_v4  ;;  %v288_v47 = vpop.permute.xlu1 %287  ;;  %v3727_v5 = vpop.permute.xlu2 %317  ;;  %v1160_v48 = vrot.slane %v1109_v9, 4  ;;  %v1148_v49 = vrot.slane %v1105_v20, 4 }
 0x106   : > { %v285_v57 = vpop.permute.xlu0 %284  ;;  %v1124_v0 = vrot.slane %v288_v47, 4 }
 0x107   : > { %v1110_v46 = vrot.slane %v285_v57, 4  ;;  %v1113_v31 = vsel %vm538_vm0, %v285_v57, %v1112_v12 }
 0x108   : > { %v1121_v17 = vperm.slane %v1113_v31, %v3287_v11 }
 0x109   : > { %v1111_v56 = vsel %vm538_vm0, %v1110_v46, %v279_v21 }
 0x10a   : > { %v1117_v14 = vperm.slane %v1111_v56, %v3287_v11  ;;  %v1158_v15 = vrot.slane %v1121_v17, 4  ;;  %v1161_v7 = vsel %vm538_vm0, %v1121_v17, %v1160_v48 }
 0x10b   : > { %426 = vrot.lane.b32.xlu2 %v3478_v61, %s4852_s16  ;;  %423 = vrot.lane.b32.xlu1 %v3478_v61, %s4853_s17  ;;  %s4868_s16 = smov 60   ;;  %s4869_s17 = smov 50  }
 0x10c   : > { %v1146_v12 = vrot.slane %v1117_v14, 4  ;;  %420 = vrot.lane.b32.xlu0 %v3478_v61, %s4854_s18  ;;  %v1149_v21 = vsel %vm538_vm0, %v1117_v14, %v1148_v49  ;;  %v1159_v57 = vsel %vm538_vm0, %v1158_v15, %v1109_v9  ;;  %s4870_s18 = smov 52  }
 0x10d   : > { %v297_v46 = vpop.permute.xlu1 %296  ;;  %v3744_v31 = vpop.permute.xlu2 %326  ;;  %v1157_v9 = vperm.slane %v1149_v21, %v3314_v35  ;;  %v1165_v14 = vperm.slane %v1159_v57, %v3314_v35 }
 0x10e   : > { %v1134_v48 = vrot.slane %v297_v46, 4  ;;  %v1137_v17 = vsel %vm538_vm0, %v297_v46, %v1136_v62  ;;  %v294_v56 = vpop.permute.xlu0 %293  ;;  %v1147_v26 = vsel %vm538_vm0, %v1146_v12, %v1105_v20 }
 0x10f   : > { %v1145_v50 = vperm.slane %v1137_v17, %v3287_v11  ;;  %v1122_v2 = vrot.slane %v294_v56, 4  ;;  %v1125_v6 = vsel %vm538_vm0, %v294_v56, %v1124_v0  ;;  %v1153_v20 = vperm.slane %v1147_v26, %v3314_v35 }
 0x110   : > { %v1135_v60 = vsel %vm538_vm0, %v1134_v48, %v3609_v25  ;;  %v1133_v49 = vperm.slane %v1125_v6, %v3287_v11  ;;  %v1212_v0 = vrot.slane %v3654_v18, 4 }
 0x111   : > { %v1141_v15 = vperm.slane %v1135_v60, %v3287_v11  ;;  %v1182_v62 = vrot.slane %v1145_v50, 4  ;;  %v1123_v46 = vsel %vm538_vm0, %v1122_v2, %v288_v47  ;;  %v1222_v60 = vrot.slane %v3686_v24, 4 }
 0x112   : > { %v1129_v12 = vperm.slane %v1123_v46, %v3287_v11  ;;  %v1184_v17 = vrot.slane %v1133_v49, 4  ;;  %v1169_v2 = vperm.slane %v1161_v7, %v3314_v35  ;;  %v1196_v48 = vrot.slane %v1153_v20, 4 }
 0x113   : > { %v1170_v56 = vrot.slane %v1141_v15, 4  ;;  %v1183_v25 = vsel %vm538_vm0, %v1182_v62, %v1133_v49  ;;  %435 = vrot.lane.b32.xlu2 %v3478_v61, %s4855_s22  ;;  %432 = vrot.lane.b32.xlu1 %v3478_v61, %s4856_s23  ;;  %v1200_v49 = vrot.slane %v1157_v9, 4  ;;  %v1204_v62 = vrot.slane %v1165_v14, 4  ;;  %s4871_s22 = smov 54   ;;  %s4881_s23 = smov 32  }
 0x114   : > { %v1172_v6 = vrot.slane %v1129_v12, 4  ;;  %429 = vrot.lane.b32.xlu0 %v3478_v61, %s4857_s24  ;;  %v1185_v26 = vsel %vm538_vm0, %v1145_v50, %v1184_v17  ;;  %v1189_v13 = vperm.slane %v1183_v25, %v3314_v35  ;;  %s4882_s24 = smov 34  }
 0x115   : > { %v306_v47 = vpop.permute.xlu1 %305  ;;  %v3770_v21 = vpop.permute.xlu2 %335  ;;  %v1171_v57 = vsel %vm538_vm0, %v1170_v56, %v1129_v12  ;;  %v1193_v17 = vperm.slane %v1185_v26, %v3314_v35 }
 0x116   : > { %v1210_v46 = vrot.slane %v306_v47, 4  ;;  %v1213_v63 = vsel %vm538_vm0, %v306_v47, %v1212_v0  ;;  %v303_v41 = vpop.permute.xlu0 %302  ;;  %v1177_v52 = vperm.slane %v1171_v57, %v3314_v35  ;;  %v1173_v50 = vsel %vm538_vm0, %v1141_v15, %v1172_v6 }
 0x117   : > { %v1223_v7 = vsel %vm538_vm0, %v1222_v60, %v303_v41  ;;  %v1224_v44 = vrot.slane %v303_v41, 4  ;;  %v1181_v0 = vperm.slane %v1173_v50, %v3314_v35  ;;  %v1221_v57 = vperm.slane %v1213_v63, %v3287_v11 }
 0x118   : > { %v1211_v12 = vsel %vm538_vm0, %v1210_v46, %v3654_v18  ;;  %v1229_v56 = vperm.slane %v1223_v7, %v3287_v11  ;;  %v1194_v22 = vrot.slane %v1177_v52, 4  ;;  %v3788_v41 = vsel %vm538_vm0, %v1177_v52, %v1196_v48 }
 0x119   : > { %v1217_v47 = vperm.slane %v1211_v12, %v3287_v11  ;;  %v1225_v25 = vsel %vm538_vm0, %v3686_v24, %v1224_v44  ;;  %v1198_v6 = vrot.slane %v1181_v0, 4  ;;  %v3799_v63 = vsel %vm538_vm0, %v1181_v0, %v1200_v49 }
 0x11a   : > { %v1233_v15 = vperm.slane %v1225_v25, %v3287_v11  ;;  %v1258_v60 = vrot.slane %v1229_v56, 4  ;;  %v3792_v18 = vsel %vm538_vm0, %v1194_v22, %v1153_v20  ;;  %4860 = vst [vmem:[#allocation33_spill] sm:$0xff] %v3799_v63  ;;  %v1202_v44 = vrot.slane %v1189_v13, 4 }
 0x11b   : > { %v1260_v26 = vrot.slane %v1217_v47, 4  ;;  %444 = vrot.lane.b32.xlu2 %v3478_v61, %s4858_s25  ;;  %441 = vrot.lane.b32.xlu1 %v3478_v61, %s4859_s26  ;;  %v3802_v52 = vsel %vm538_vm0, %v1189_v13, %v1204_v62  ;;  %v3807_v22 = vsel %vm538_vm0, %v1198_v6, %v1157_v9  ;;  %v1206_v48 = vrot.slane %v1193_v17, 4  ;;  %s4884_s25 = smov 36   ;;  %s4888_s26 = smov 26  }
 0x11c   : > { %4861 = vst [vmem:[#allocation34_spill] sm:$0xff] %v3802_v52  ;;  %v1270_v24 = vrot.slane %v1233_v15, 4  ;;  %438 = vrot.lane.b32.xlu0 %v3478_v61, %s4862_s27  ;;  %v1259_v20 = vsel %vm538_vm0, %v1258_v60, %v1217_v47  ;;  %v1234_v46 = vrot.slane %v3727_v5, 4  ;;  %v1272_v7 = vrot.slane %v1221_v57, 4  ;;  %s4889_s27 = smov 28  }
 0x11d   : > { %v315_v50 = vpop.permute.xlu1 %314  ;;  %v3811_v49 = vpop.permute.xlu2 %344  ;;  %v1261_v12 = vsel %vm538_vm0, %v1229_v56, %v1260_v26  ;;  %v3815_v13 = vsel %vm538_vm0, %v1202_v44, %v1165_v14  ;;  %v1208_v25 = vrot.slane %v1169_v2, 4  ;;  %v3820_v47 = vsel %vm538_vm0, %v1206_v48, %v1169_v2 }
 0x11e   : > { %4863 = vst [vmem:[#allocation35_spill] sm:$0xff] %v3815_v13  ;;  %v312_v62 = vpop.permute.xlu0 %311  ;;  %v1271_v0 = vsel %vm538_vm0, %v1270_v24, %v1221_v57  ;;  %v1273_v56 = vsel %vm538_vm0, %v1233_v15, %v1272_v7  ;;  %v1248_v14 = vrot.slane %v315_v50, 4  ;;  %v1265_v24 = vperm.slane %v1259_v20, %v3314_v35 }
 0x11f   : > { %v1235_v9 = vsel %vm538_vm0, %v1234_v46, %v312_v62  ;;  %v1236_v6 = vrot.slane %v312_v62, 4  ;;  %4864 = vst [vmem:[#allocation36_spill] sm:$0xff] %v3820_v47  ;;  %v3823_v60 = vsel %vm538_vm0, %v1193_v17, %v1208_v25  ;;  %v1281_v48 = vperm.slane %v1273_v56, %v3314_v35 }
 0x120   : > { %4865 = vst [vmem:[#allocation37_spill] sm:$0xff] %v3823_v60  ;;  %v1241_v26 = vperm.slane %v1235_v9, %v3287_v11  ;;  %v1336_v62 = vrot.slane %v3744_v31, 4 }
 0x121   : > { %v1237_v52 = vsel %vm538_vm0, %v3727_v5, %v1236_v6  ;;  %v1277_v6 = vperm.slane %v1271_v0, %v3314_v35 }
 0x122   : > { %v1245_v57 = vperm.slane %v1237_v52, %v3287_v11  ;;  %v1269_v52 = vperm.slane %v1261_v12, %v3314_v35  ;;  %v1284_v9 = vrot.slane %v1241_v26, 4  ;;  %v1308_v12 = vrot.slane %v1265_v24, 4 }
 0x123   : > { %453 = vrot.lane.b32.xlu2 %v3478_v61, %s4866_s13  ;;  %450 = vrot.lane.b32.xlu1 %v3478_v61, %s4867_s15  ;;  %v1316_v16 = vrot.slane %v1277_v6, 4  ;;  %s4890_s13 = smov 30   ;;  %s4891_s15 = smov 20  }
 0x124   : > { %447 = vrot.lane.b32.xlu0 %v3478_v61, %s4868_s16  ;;  %v1296_v46 = vrot.slane %v1245_v57, 4  ;;  %s4892_s16 = smov 22  }
 0x125   : > { %v324_v2 = vpop.permute.xlu1 %323  ;;  %v3835_v17 = vpop.permute.xlu2 %354 }
 0x126   : > { %v321_v5 = vpop.permute.xlu0 %320  ;;  %v1324_v20 = vrot.slane %v324_v2, 4 }
 0x127   : > { %v1246_v44 = vrot.slane %v321_v5, 4  ;;  %v1249_v15 = vsel %vm538_vm0, %v321_v5, %v1248_v14  ;;  %v1320_v5 = vrot.slane %v1281_v48, 4 }
 0x128   : > { %v1257_v7 = vperm.slane %v1249_v15, %v3287_v11 }
 0x129   : > { %v1247_v25 = vsel %vm538_vm0, %v1246_v44, %v315_v50  ;;  %v1312_v44 = vrot.slane %v1269_v52, 4 }
 0x12a   : > { %v1253_v60 = vperm.slane %v1247_v25, %v3287_v11  ;;  %v1294_v47 = vrot.slane %v1257_v7, 4  ;;  %v1297_v14 = vsel %vm538_vm0, %v1257_v7, %v1296_v46 }
 0x12b   : > { %462 = vrot.lane.b32.xlu2 %v3478_v61, %s4869_s17  ;;  %459 = vrot.lane.b32.xlu1 %v3478_v61, %s4870_s18  ;;  %v1305_v56 = vperm.slane %v1297_v14, %v3314_v35  ;;  %s4893_s17 = smov 24   ;;  %s4897_s18 = smov 16  }
 0x12c   : > { %v1282_v50 = vrot.slane %v1253_v60, 4  ;;  %456 = vrot.lane.b32.xlu0 %v3478_v61, %s4871_s22  ;;  %v1285_v0 = vsel %vm538_vm0, %v1253_v60, %v1284_v9  ;;  %v1295_v15 = vsel %vm538_vm0, %v1294_v47, %v1245_v57  ;;  %s4898_s22 = smov 18  }
 0x12d   : > { %v333_v46 = vpop.permute.xlu1 %332  ;;  %v3857_v7 = vpop.permute.xlu2 %363  ;;  %v1293_v25 = vperm.slane %v1285_v0, %v3314_v35  ;;  %v1301_v13 = vperm.slane %v1295_v15, %v3314_v35  ;;  %v3862_v14 = vsel %vm538_vm0, %v1305_v56, %v1320_v5  ;;  %v1318_v9 = vrot.slane %v1305_v56, 4 }
 0x12e   : > { %4872 = vst [vmem:[#allocation38_spill] sm:$0xff] %v3862_v14  ;;  %v1334_v63 = vrot.slane %v333_v46, 4  ;;  %v1337_v4 = vsel %vm538_vm0, %v333_v46, %v1336_v62  ;;  %v330_v38 = vpop.permute.xlu0 %329  ;;  %v1283_v60 = vsel %vm538_vm0, %v1282_v50, %v1241_v26  ;;  %v1348_v46 = vrot.slane %v3770_v21, 4 }
 0x12f   : > { %v1345_v47 = vperm.slane %v1337_v4, %v3287_v11  ;;  %v1322_v57 = vrot.slane %v330_v38, 4  ;;  %v1325_v59 = vsel %vm538_vm0, %v330_v38, %v1324_v20  ;;  %v1289_v0 = vperm.slane %v1283_v60, %v3314_v35 }
 0x130   : > { %v1335_v15 = vsel %vm538_vm0, %v1334_v63, %v3744_v31  ;;  %v1333_v5 = vperm.slane %v1325_v59, %v3287_v11  ;;  %v1310_v14 = vrot.slane %v1293_v25, 4  ;;  %v3873_v19 = vsel %vm538_vm0, %v1293_v25, %v1312_v44 }
 0x131   : > { %4873 = vst [vmem:[#allocation39_spill] sm:$0xff] %v3873_v19  ;;  %v1341_v62 = vperm.slane %v1335_v15, %v3287_v11  ;;  %v1382_v26 = vrot.slane %v1345_v47, 4  ;;  %v1323_v56 = vsel %vm538_vm0, %v1322_v57, %v324_v2  ;;  %v1306_v4 = vrot.slane %v1289_v0, 4 }
 0x132   : > { %v1329_v50 = vperm.slane %v1323_v56, %v3287_v11  ;;  %v1384_v38 = vrot.slane %v1333_v5, 4  ;;  %v3879_v20 = vsel %vm538_vm0, %v1310_v14, %v1269_v52  ;;  %v3882_v31 = vsel %vm538_vm0, %v1289_v0, %v1308_v12 }
 0x133   : > { %v1370_v59 = vrot.slane %v1341_v62, 4  ;;  %471 = vrot.lane.b32.xlu2 %v3478_v61, %s3067_s5  ;;  %468 = vrot.lane.b32.xlu1 %v3478_v61, %s3068_s28  ;;  %v3889_v63 = vsel %vm538_vm0, %v1306_v4, %v1265_v24  ;;  %v1314_v2 = vrot.slane %v1301_v13, 4  ;;  %v1383_v44 = vsel %vm538_vm0, %v1382_v26, %v1333_v5  ;;  %s4877_s28 = smov 38   ;;  %s4879_s5 = smov 42  }
 0x134   : > { %v1372_v52 = vrot.slane %v1329_v50, 4  ;;  %465 = vrot.lane.b32.xlu0 %v3478_v61, %s3069_s4  ;;  %v3896_v12 = vsel %vm538_vm0, %v1301_v13, %v1316_v16  ;;  %v3899_v25 = vsel %vm538_vm0, %v1318_v9, %v1281_v48  ;;  %v1358_v14 = vrot.slane %v3811_v49, 4  ;;  %s4878_s4 = smov 40  }
 0x135   : > { %4874 = vst [vmem:[#allocation40_spill] sm:$0xff] %v3896_v12  ;;  %v342_v60 = vpop.permute.xlu1 %341  ;;  %v3902_v24 = vpop.permute.xlu2 %372  ;;  %v1371_v57 = vsel %vm538_vm0, %v1370_v59, %v1329_v50  ;;  %v3906_v0 = vsel %vm538_vm0, %v1314_v2, %v1277_v6  ;;  %v1385_v15 = vsel %vm538_vm0, %v1345_v47, %v1384_v38 }
 0x136   : > { %4875 = vst [vmem:[#allocation41_spill] sm:$0xff] %v3899_v25  ;;  %v1346_v5 = vrot.slane %v342_v60, 4  ;;  %v1349_v26 = vsel %vm538_vm0, %v342_v60, %v1348_v46  ;;  %v339_v16 = vpop.permute.xlu0 %338  ;;  %v1373_v56 = vsel %vm538_vm0, %v1341_v62, %v1372_v52  ;;  %v1377_v6 = vperm.slane %v1371_v57, %v3314_v35 }
 0x137   : > { %4876 = vst [vmem:[#allocation42_spill] sm:$0xff] %v3906_v0  ;;  %v1357_v13 = vperm.slane %v1349_v26, %v3287_v11  ;;  %v1359_v48 = vsel %vm538_vm0, %v1358_v14, %v339_v16  ;;  %v1360_v9 = vrot.slane %v339_v16, 4  ;;  %v1381_v47 = vperm.slane %v1373_v56, %v3314_v35 }
 0x138   : > { %v1347_v4 = vsel %vm538_vm0, %v1346_v5, %v3770_v21  ;;  %v1365_v50 = vperm.slane %v1359_v48, %v3287_v11  ;;  %v1436_v62 = vrot.slane %v3478_v61, 4  ;;  %v1393_v52 = vperm.slane %v1385_v15, %v3314_v35 }
 0x139   : > { %v1353_v38 = vperm.slane %v1347_v4, %v3287_v11  ;;  %v1408_v59 = vrot.slane %v1357_v13, 4  ;;  %v1361_v2 = vsel %vm538_vm0, %v3811_v49, %v1360_v9  ;;  %v1446_v21 = vrot.slane %v3835_v17, 4 }
 0x13a   : > { %v1369_v46 = vperm.slane %v1361_v2, %v3287_v11  ;;  %v1394_v14 = vrot.slane %v1365_v50, 4  ;;  %v1389_v57 = vperm.slane %v1383_v44, %v3314_v35  ;;  %v1420_v5 = vrot.slane %v1377_v6, 4 }
 0x13b   : > { %v1396_v60 = vrot.slane %v1353_v38, 4  ;;  %480 = vrot.lane.b32.xlu2 %v3478_v61, %s4877_s28  ;;  %477 = vrot.lane.b32.xlu1 %v3478_v61, %s4878_s4  ;;  %v1424_v26 = vrot.slane %v1381_v47, 4  ;;  %v1432_v2 = vrot.slane %v1393_v52, 4  ;;  %s4902_s28 = smov 8   ;;  %s4903_s4 = smov 10  }
 0x13c   : > { %474 = vrot.lane.b32.xlu0 %v3478_v61, %s4879_s5  ;;  %v1395_v49 = vsel %vm538_vm0, %v1394_v14, %v1353_v38  ;;  %v1409_v15 = vsel %vm538_vm0, %v1369_v46, %v1408_v59  ;;  %v1406_v48 = vrot.slane %v1369_v46, 4  ;;  %s4904_s5 = smov 12  }
 0x13d   : > { %v1397_v16 = vsel %vm538_vm0, %v1365_v50, %v1396_v60  ;;  %v352_v9 = vpop.permute.xlu1 %351  ;;  %v3935_v56 = vpop.permute.xlu2 %381  ;;  %v1401_v4 = vperm.slane %v1395_v49, %v3314_v35  ;;  %v1417_v38 = vperm.slane %v1409_v15, %v3314_v35 }
 0x13e   : > { %v1434_v25 = vrot.slane %v352_v9, 4  ;;  %v1437_v44 = vsel %vm538_vm0, %v352_v9, %v1436_v62  ;;  %v349_v12 = vpop.permute.xlu0 %348  ;;  %v1405_v0 = vperm.slane %v1397_v16, %v3314_v35 }
 0x13f   : > { %v1445_v14 = vperm.slane %v1437_v44, %v3287_v11  ;;  %v1447_v59 = vsel %vm538_vm0, %v1446_v21, %v349_v12  ;;  %v1448_v50 = vrot.slane %v349_v12, 4  ;;  %v1418_v46 = vrot.slane %v1401_v4, 4 }
 0x140   : > { %v1435_v60 = vsel %vm538_vm0, %v1434_v25, %v3478_v61  ;;  %v1453_v49 = vperm.slane %v1447_v59, %v3287_v11  ;;  %v1422_v19 = vrot.slane %v1405_v0, 4  ;;  %v3947_v42 = vsel %vm538_vm0, %v1401_v4, %v1420_v5 }
 0x141   : > { %v1441_v62 = vperm.slane %v1435_v60, %v3287_v11  ;;  %v1496_v16 = vrot.slane %v1445_v14, 4  ;;  %v1449_v15 = vsel %vm538_vm0, %v3835_v17, %v1448_v50  ;;  %v3953_v9 = vsel %vm538_vm0, %v1418_v46, %v1377_v6 }
 0x142   : > { %v1457_v12 = vperm.slane %v1449_v15, %v3287_v11  ;;  %v1482_v21 = vrot.slane %v1453_v49, 4  ;;  %v3957_v25 = vsel %vm538_vm0, %v1422_v19, %v1381_v47  ;;  %v3960_v44 = vsel %vm538_vm0, %v1405_v0, %v1424_v26 }
 0x143   : > { %4880 = vst [vmem:[#allocation43_spill] sm:$0xff] %v3960_v44  ;;  %v1484_v5 = vrot.slane %v1441_v62, 4  ;;  %489 = vrot.lane.b32.xlu2 %v3478_v61, %s4881_s23  ;;  %486 = vrot.lane.b32.xlu1 %v3478_v61, %s4882_s24  ;;  %v1407_v17 = vsel %vm538_vm0, %v1406_v48, %v1357_v13  ;;  %v1430_v6 = vrot.slane %v1417_v38, 4  ;;  %v3968_v4 = vsel %vm538_vm0, %v1417_v38, %v1432_v2 }
 0x144   : > { %4883 = vst [vmem:[#allocation44_spill] sm:$0xff] %v3968_v4  ;;  %v1494_v59 = vrot.slane %v1457_v12, 4  ;;  %483 = vrot.lane.b32.xlu0 %v3478_v61, %s4884_s25  ;;  %v1483_v19 = vsel %vm538_vm0, %v1482_v21, %v1441_v62  ;;  %v1413_v0 = vperm.slane %v1407_v17, %v3314_v35  ;;  %v1497_v47 = vsel %vm538_vm0, %v1457_v12, %v1496_v16 }
 0x145   : > { %v1458_v26 = vrot.slane %v3857_v7, 4  ;;  %v361_v50 = vpop.permute.xlu1 %360  ;;  %v3976_v46 = vpop.permute.xlu2 %390  ;;  %v1485_v13 = vsel %vm538_vm0, %v1453_v49, %v1484_v5  ;;  %v3980_v48 = vsel %vm538_vm0, %v1430_v6, %v1393_v52  ;;  %v1428_v21 = vrot.slane %v1389_v57, 4 }
 0x146   : > { %4885 = vst [vmem:[#allocation45_spill] sm:$0xff] %v3980_v48  ;;  %v358_v2 = vpop.permute.xlu0 %357  ;;  %v1426_v38 = vrot.slane %v1413_v0, 4  ;;  %v1495_v62 = vsel %vm538_vm0, %v1494_v59, %v1445_v14  ;;  %v1472_v49 = vrot.slane %v361_v50, 4 }
 0x147   : > { %v1459_v60 = vsel %vm538_vm0, %v1458_v26, %v358_v2  ;;  %v1460_v15 = vrot.slane %v358_v2, 4  ;;  %v3990_v17 = vsel %vm538_vm0, %v1413_v0, %v1428_v21  ;;  %v1489_v0 = vperm.slane %v1483_v19, %v3314_v35 }
 0x148   : > { %v3985_v16 = vsel %vm538_vm0, %v1426_v38, %v1389_v57  ;;  %4887 = vst [vmem:[#allocation47_spill] sm:$0xff] %v3990_v17  ;;  %v1505_v26 = vperm.slane %v1497_v47, %v3314_v35 }
 0x149   : > { %4886 = vst [vmem:[#allocation46_spill] sm:$0xff] %v3985_v16  ;;  %v1461_v12 = vsel %vm538_vm0, %v3857_v7, %v1460_v15  ;;  %v1465_v7 = vperm.slane %v1459_v60, %v3287_v11  ;;  %v1493_v15 = vperm.slane %v1485_v13, %v3314_v35  ;;  %v1501_v60 = vperm.slane %v1495_v62, %v3314_v35 }
 0x14a   : > { %v1469_v52 = vperm.slane %v1461_v12, %v3287_v11  ;;  %v1532_v47 = vrot.slane %v1489_v0, 4  ;;  %v1544_v13 = vrot.slane %v1505_v26, 4 }
 0x14b   : > { %498 = vrot.lane.b32.xlu2 %v3478_v61, %s4888_s26  ;;  %495 = vrot.lane.b32.xlu1 %v3478_v61, %s4889_s27  ;;  %v1508_v12 = vrot.slane %v1465_v7, 4  ;;  %v1540_v44 = vrot.slane %v1501_v60, 4 }
 0x14c   : > { %492 = vrot.lane.b32.xlu0 %v3478_v61, %s4890_s13  ;;  %v1520_v2 = vrot.slane %v1469_v52, 4  ;;  %v1560_v61 = vrot.slane %v3902_v24, 4  ;;  %s2666_s13 = scalar_lea.sflag [#allocation4], %s3178_s3 }
 0x14d   : > { %v370_v57 = vpop.permute.xlu1 %369  ;;  %v3999_v14 = vpop.permute.xlu2 %399 }
 0x14e   : > { %v367_v5 = vpop.permute.xlu0 %366  ;;  %v1548_v19 = vrot.slane %v370_v57, 4 }
 0x14f   : > { %v1470_v6 = vrot.slane %v367_v5, 4  ;;  %v1473_v59 = vsel %vm538_vm0, %v367_v5, %v1472_v49  ;;  %v4013_v5 = vld [vmem:[%s3182_s12 + $0x8] sm:$0xff]  ;;  %s4896_s12 = smov 14  }
 0x150   : > { %v1481_v38 = vperm.slane %v1473_v59, %v3287_v11  ;;  %v1536_v59 = vrot.slane %v1493_v15, 4 }
 0x151   : > { %v1471_v21 = vsel %vm538_vm0, %v1470_v6, %v361_v50 }
 0x152   : > { %v1477_v4 = vperm.slane %v1471_v21, %v3287_v11  ;;  %v1518_v48 = vrot.slane %v1481_v38, 4  ;;  %v1521_v49 = vsel %vm538_vm0, %v1481_v38, %v1520_v2 }
 0x153   : > { %507 = vrot.lane.b32.xlu2 %v4013_v5, %s4891_s15  ;;  %504 = vrot.lane.b32.xlu1 %v4013_v5, %s4892_s16  ;;  %v1529_v50 = vperm.slane %v1521_v49, %v3314_v35 }
 0x154   : > { %v1506_v62 = vrot.slane %v1477_v4, 4  ;;  %501 = vrot.lane.b32.xlu0 %v4013_v5, %s4893_s17  ;;  %v1509_v6 = vsel %vm538_vm0, %v1477_v4, %v1508_v12  ;;  %v1519_v2 = vsel %vm538_vm0, %v1518_v48, %v1469_v52 }
 0x155   : > { %v379_v38 = vpop.permute.xlu1 %378  ;;  %v4024_v21 = vpop.permute.xlu2 %408  ;;  %v1517_v17 = vperm.slane %v1509_v6, %v3314_v35  ;;  %v1525_v16 = vperm.slane %v1519_v2, %v3314_v35  ;;  %v4029_v49 = vsel %vm538_vm0, %v1529_v50, %v1544_v13  ;;  %v1542_v12 = vrot.slane %v1529_v50, 4 }
 0x156   : > { %4894 = vst [vmem:[#allocation48_spill] sm:$0xff] %v4029_v49  ;;  %v1558_v8 = vrot.slane %v379_v38, 4  ;;  %v1561_v58 = vsel %vm538_vm0, %v379_v38, %v1560_v61  ;;  %v376_v43 = vpop.permute.xlu0 %375  ;;  %v1507_v4 = vsel %vm538_vm0, %v1506_v62, %v1465_v7 }
 0x157   : > { %v1569_v48 = vperm.slane %v1561_v58, %v3287_v11  ;;  %v1546_v52 = vrot.slane %v376_v43, 4  ;;  %v1549_v36 = vsel %vm538_vm0, %v376_v43, %v1548_v19  ;;  %v1513_v6 = vperm.slane %v1507_v4, %v3314_v35 }
 0x158   : > { %v1559_v2 = vsel %vm538_vm0, %v1558_v8, %v3902_v24  ;;  %v1557_v13 = vperm.slane %v1549_v36, %v3287_v11  ;;  %v1534_v49 = vrot.slane %v1517_v17, 4  ;;  %v4040_v54 = vsel %vm538_vm0, %v1517_v17, %v1536_v59 }
 0x159   : > { %4895 = vst [vmem:[#allocation49_spill] sm:$0xff] %v4040_v54  ;;  %v1565_v61 = vperm.slane %v1559_v2, %v3287_v11  ;;  %v1606_v7 = vrot.slane %v1569_v48, 4  ;;  %v1547_v50 = vsel %vm538_vm0, %v1546_v52, %v370_v57  ;;  %v1530_v58 = vrot.slane %v1513_v6, 4 }
 0x15a   : > { %v1553_v62 = vperm.slane %v1547_v50, %v3287_v11  ;;  %v1608_v43 = vrot.slane %v1557_v13, 4  ;;  %v4046_v19 = vsel %vm538_vm0, %v1534_v49, %v1493_v15  ;;  %v4049_v8 = vsel %vm538_vm0, %v1513_v6, %v1532_v47 }
 0x15b   : > { %v1594_v36 = vrot.slane %v1565_v61, 4  ;;  %516 = vrot.lane.b32.xlu2 %v4013_v5, %s4896_s12  ;;  %513 = vrot.lane.b32.xlu1 %v4013_v5, %s4897_s18  ;;  %v4056_v24 = vsel %vm538_vm0, %v1530_v58, %v1489_v0  ;;  %v1538_v17 = vrot.slane %v1525_v16, 4  ;;  %v1607_v57 = vsel %vm538_vm0, %v1606_v7, %v1557_v13  ;;  %s2964_s12 = scalar_lea.hbm %s4762_s1, 192 }
 0x15c   : > { %v1572_v59 = vrot.slane %v3935_v56, 4  ;;  %v1596_v15 = vrot.slane %v1553_v62, 4  ;;  %510 = vrot.lane.b32.xlu0 %v4013_v5, %s4898_s22  ;;  %v4063_v47 = vsel %vm538_vm0, %v1525_v16, %v1540_v44  ;;  %v4066_v38 = vsel %vm538_vm0, %v1542_v12, %v1505_v26 }
 0x15d   : > { %4899 = vst [vmem:[#allocation50_spill] sm:$0xff] %v4063_v47  ;;  %v1582_v49 = vrot.slane %v3976_v46, 4  ;;  %v388_v4 = vpop.permute.xlu1 %387  ;;  %v4069_v0 = vpop.permute.xlu2 %417  ;;  %v1595_v52 = vsel %vm538_vm0, %v1594_v36, %v1553_v62  ;;  %v4073_v6 = vsel %vm538_vm0, %v1538_v17, %v1501_v60  ;;  %v1609_v2 = vsel %vm538_vm0, %v1569_v48, %v1608_v43 }
 0x15e   : > { %4900 = vst [vmem:[#allocation51_spill] sm:$0xff] %v4066_v38  ;;  %v1570_v13 = vrot.slane %v388_v4, 4  ;;  %v1573_v7 = vsel %vm538_vm0, %v388_v4, %v1572_v59  ;;  %v385_v44 = vpop.permute.xlu0 %384  ;;  %v1597_v50 = vsel %vm538_vm0, %v1565_v61, %v1596_v15  ;;  %v1601_v43 = vperm.slane %v1595_v52, %v3314_v35 }
 0x15f   : > { %4901 = vst [vmem:[#allocation52_spill] sm:$0xff] %v4073_v6  ;;  %v1581_v16 = vperm.slane %v1573_v7, %v3287_v11  ;;  %v1583_v26 = vsel %vm538_vm0, %v1582_v49, %v385_v44  ;;  %v1584_v12 = vrot.slane %v385_v44, 4  ;;  %v1605_v49 = vperm.slane %v1597_v50, %v3314_v35 }
 0x160   : > { %v1571_v58 = vsel %vm538_vm0, %v1570_v13, %v3935_v56  ;;  %v1589_v62 = vperm.slane %v1583_v26, %v3287_v11  ;;  %v1617_v61 = vperm.slane %v1609_v2, %v3314_v35  ;;  %v1658_v15 = vrot.slane %v3999_v14, 4 }
 0x161   : > { %v1577_v60 = vperm.slane %v1571_v58, %v3287_v11  ;;  %v1632_v36 = vrot.slane %v1581_v16, 4  ;;  %v1585_v48 = vsel %vm538_vm0, %v3976_v46, %v1584_v12  ;;  %v1613_v52 = vperm.slane %v1607_v57, %v3314_v35 }
 0x162   : > { %v1593_v17 = vperm.slane %v1585_v48, %v3287_v11  ;;  %v1618_v59 = vrot.slane %v1589_v62, 4  ;;  %v1644_v12 = vrot.slane %v1601_v43, 4  ;;  %v1648_v38 = vrot.slane %v1605_v49, 4 }
 0x163   : > { %v1620_v56 = vrot.slane %v1577_v60, 4  ;;  %525 = vrot.lane.b32.xlu2 %v4013_v5, %s4902_s28  ;;  %522 = vrot.lane.b32.xlu1 %v4013_v5, %s4903_s4  ;;  %v1652_v47 = vrot.slane %v1613_v52, 4 }
 0x164   : > { %v1630_v4 = vrot.slane %v1593_v17, 4  ;;  %519 = vrot.lane.b32.xlu0 %v4013_v5, %s4904_s5  ;;  %v1619_v46 = vsel %vm538_vm0, %v1618_v59, %v1577_v60  ;;  %v1633_v13 = vsel %vm538_vm0, %v1593_v17, %v1632_v36  ;;  %v1656_v59 = vrot.slane %v1617_v61, 4 }
 0x165   : > { %v1621_v2 = vsel %vm538_vm0, %v1589_v62, %v1620_v56  ;;  %v397_v7 = vpop.permute.xlu1 %396  ;;  %v4101_v44 = vpop.permute.xlu2 %426  ;;  %v1625_v26 = vperm.slane %v1619_v46, %v3314_v35  ;;  %v1641_v50 = vperm.slane %v1633_v13, %v3314_v35 }
 0x166   : > { %v394_v58 = vpop.permute.xlu0 %393  ;;  %v1629_v48 = vperm.slane %v1621_v2, %v3314_v35  ;;  %v1631_v60 = vsel %vm538_vm0, %v1630_v4, %v1581_v16 }
 0x167   : > { %v1659_v57 = vsel %vm538_vm0, %v1658_v15, %v394_v58  ;;  %v1660_v36 = vrot.slane %v394_v58, 4  ;;  %v1642_v17 = vrot.slane %v1625_v26, 4  ;;  %v4109_v62 = vsel %vm538_vm0, %v1625_v26, %v1644_v12 }
 0x168   : > { %v1646_v56 = vrot.slane %v1629_v48, 4  ;;  %v4112_v46 = vsel %vm538_vm0, %v1629_v48, %v1648_v38  ;;  %v1637_v13 = vperm.slane %v1631_v60, %v3314_v35  ;;  %v1654_v4 = vrot.slane %v1641_v50, 4 }
 0x169   : > { %4905 = vst [vmem:[#allocation53_spill] sm:$0xff] %v4112_v46  ;;  %v1661_v2 = vsel %vm538_vm0, %v3999_v14, %v1660_v36  ;;  %v4118_v16 = vsel %vm538_vm0, %v1642_v17, %v1601_v43  ;;  %v4121_v15 = vsel %vm538_vm0, %v1641_v50, %v1656_v59  ;;  %v1672_v58 = vrot.slane %v397_v7, 4 }
 0x16a   : > { %4906 = vst [vmem:[#allocation54_spill] sm:$0xff] %v4121_v15  ;;  %v4124_v26 = vsel %vm538_vm0, %v1646_v56, %v1605_v49  ;;  %v1650_v12 = vrot.slane %v1637_v13, 4  ;;  %v4131_v14 = vsel %vm538_vm0, %v1637_v13, %v1652_v47  ;;  %v4134_v38 = vsel %vm538_vm0, %v1654_v4, %v1617_v61 }
 0x16b   : > { %534 = vrot.lane.b32.xlu2 %v4013_v5, %s3090_s30  ;;  %531 = vrot.lane.b32.xlu1 %v4013_v5, %s3091_s29  ;;  %4907 = vst [vmem:[#allocation55_spill] sm:$0xff] %v4131_v14  ;;  %v1669_v43 = vperm.slane %v1661_v2, %v3287_v11  ;;  %v1665_v60 = vperm.slane %v1659_v57, %v3287_v11  ;;  %s2778_s29 = sshll.u32 %s3178_s3, 6 }
 0x16c   : > { %4908 = vst [vmem:[#allocation56_spill] sm:$0xff] %v4134_v38  ;;  %528 = vrot.lane.b32.xlu0 %v4013_v5, %s3092_s2  ;;  %v4140_v49 = vsel %vm538_vm0, %v1650_v12, %v1613_v52  ;;  %v1696_v12 = vrot.slane %v4024_v21, 4  ;;  %s4707_s30 = scalar_lea.vmem [#allocation5], %s2778_s29  ;;  %s2780_s2 = sshll.u32 %s3018_s9, 3 }
 0x16d   : > { %4909 = vst [vmem:[#allocation57_spill] sm:$0xff] %v4140_v49  ;;  %v406_v50 = vpop.permute.xlu1 %405  ;;  %v4142_v48 = vpop.permute.xlu2 %435  ;;  %v1720_v17 = vrot.slane %v1669_v43, 4  ;;  %v1708_v13 = vrot.slane %v1665_v60, 4  ;;  %s2679_s25 = scalar_lea.hbm %s4762_s1, %s2780_s2  ;;  %s2680_s26 = sshll.u32 %s4707_s30, 4  ;;  %s2681_s26 = int_to_ptr.vmem [resolvable:$true] %s2680_s26 }
 0x16e   : > { %v403_v59 = vpop.permute.xlu0 %402  ;;  %v1684_v4 = vrot.slane %v406_v50, 4  ;;  %s2682_s27 = sshll.u32 %s2679_s25, 4  ;;  %s2683_s27 = int_to_ptr.hbm [resolvable:$true] %s2682_s27 }
 0x16f   : > { %v1670_v36 = vrot.slane %v403_v59, 4  ;;  %v1673_v47 = vsel %vm538_vm0, %v403_v59, %v1672_v58  ;;  %s2958_s15 = sshra.s32 %s2683_s27, 4  ;;  %s2959_s15 = int_to_ptr.hbm [resolvable:$true] %s2958_s15 }
 0x170   : > { %v1681_v61 = vperm.slane %v1673_v47, %v3287_v11  ;;  %s2960_s9 = scalar_lea.hbm %s2959_s15, 64  ;;  %p2965_p6 = scmp.lt.s32.totalorder %s2959_s15, %s4762_s1 }
 0x171   : > { %v1671_v56 = vsel %vm538_vm0, %v1670_v36, %v397_v7  ;;  %p2961_p3 = scmp.ne.s32.totalorder %s2959_s15, %s2960_s9  ;;  %p2966_p7 = scmp.lt.s32.totalorder %s2964_s12, %s2960_s9 }
 0x172   : > { %v1677_v5 = vperm.slane %v1671_v56, %v3287_v11  ;;  %v1718_v2 = vrot.slane %v1681_v61, 4  ;;  %v1721_v52 = vsel %vm538_vm0, %v1681_v61, %v1720_v17 }
 0x173   : > { %v1729_v49 = vperm.slane %v1721_v52, %v3314_v35  ;;  %v1772_v52 = vrot.slane %v4069_v0, 4  ;;  %p2962_p4 = pnand %p2961_p3, %p3156_p9  ;;  %p2967_p8 = por %p2966_p7, %p2965_p6 }
 0x174   : > { %v1706_v15 = vrot.slane %v1677_v5, 4  ;;  %v1709_v57 = vsel %vm538_vm0, %v1677_v5, %v1708_v13  ;;  %v1719_v38 = vsel %vm538_vm0, %v1718_v2, %v1669_v43 }
 0x175   : > { %v415_v58 = vpop.permute.xlu1 %414  ;;  %v4157_v61 = vpop.permute.xlu2 %444  ;;  %v1717_v5 = vperm.slane %v1709_v57, %v3314_v35  ;;  %v1725_v2 = vperm.slane %v1719_v38, %v3314_v35  ;;  %p2963_p5 = pneg %p2962_p4 }
 0x176   : > { %v1694_v59 = vrot.slane %v415_v58, 4  ;;  %v1697_v47 = vsel %vm538_vm0, %v415_v58, %v1696_v12  ;;  %v412_v14 = vpop.permute.xlu0 %411  ;;  %v1707_v7 = vsel %vm538_vm0, %v1706_v15, %v1665_v60 }
 0x177   : > { %v1705_v36 = vperm.slane %v1697_v47, %v3287_v11  ;;  %v1682_v56 = vrot.slane %v412_v14, 4  ;;  %v1685_v17 = vsel %vm538_vm0, %v412_v14, %v1684_v4  ;;  %v1713_v14 = vperm.slane %v1707_v7, %v3314_v35  ;;  %p2968_p10 = pnand %p2967_p8, %p2963_p5 }
 0x178   : > { %v1695_v13 = vsel %vm538_vm0, %v1694_v59, %v4024_v21  ;;  %v1693_v43 = vperm.slane %v1685_v17, %v3287_v11  ;;  %v1782_v21 = vrot.slane %v4101_v44, 4  ;;  %v1760_v17 = vrot.slane %v1717_v5, 4 }
 0x179   : > { %v1701_v15 = vperm.slane %v1695_v13, %v3287_v11  ;;  %v1742_v60 = vrot.slane %v1705_v36, 4  ;;  %v1683_v12 = vsel %vm538_vm0, %v1682_v56, %v406_v50  ;;  %v1768_v13 = vrot.slane %v1729_v49, 4 }
 0x17a   : > { %v1689_v4 = vperm.slane %v1683_v12, %v3287_v11  ;;  %v1744_v58 = vrot.slane %v1693_v43, 4  ;;  %v1756_v56 = vrot.slane %v1713_v14, 4  ;;  %v1764_v12 = vrot.slane %v1725_v2, 4 }
 0x17b   : > { %v1730_v59 = vrot.slane %v1701_v15, 4  ;;  %v1743_v47 = vsel %vm538_vm0, %v1742_v60, %v1693_v43 }
 0x17c   : > { %v1732_v57 = vrot.slane %v1689_v4, 4  ;;  %v1745_v38 = vsel %vm538_vm0, %v1705_v36, %v1744_v58  ;;  %v1749_v7 = vperm.slane %v1743_v47, %v3314_v35 }
 0x17d   : > { %v424_v46 = vpop.permute.xlu1 %423  ;;  %v1731_v50 = vsel %vm538_vm0, %v1730_v59, %v1689_v4  ;;  %v1753_v43 = vperm.slane %v1745_v38, %v3314_v35 }
 0x17e   : > { %v1770_v6 = vrot.slane %v424_v46, 4  ;;  %v1773_v54 = vsel %vm538_vm0, %v424_v46, %v1772_v52  ;;  %v421_v32 = vpop.permute.xlu0 %420  ;;  %v1737_v51 = vperm.slane %v1731_v50, %v3314_v35  ;;  %v1733_v27 = vsel %vm538_vm0, %v1701_v15, %v1732_v57 }
 0x17f   : > { %v1781_v60 = vperm.slane %v1773_v54, %v3287_v11  ;;  %v1783_v36 = vsel %vm538_vm0, %v1782_v21, %v421_v32  ;;  %v1784_v58 = vrot.slane %v421_v32, 4  ;;  %v1741_v46 = vperm.slane %v1733_v27, %v3314_v35  ;;  %v4188_v54 = vpop.permute.xlu2 %453 }
 0x180   : > { %v1771_v4 = vsel %vm538_vm0, %v1770_v6, %v4069_v0  ;;  %v1789_v59 = vperm.slane %v1783_v36, %v3287_v11  ;;  %v1754_v47 = vrot.slane %v1737_v51, 4  ;;  %v4191_v32 = vsel %vm538_vm0, %v1737_v51, %v1756_v56 }
 0x181   : > { %v1777_v52 = vperm.slane %v1771_v4, %v3287_v11  ;;  %v1832_v50 = vrot.slane %v1781_v60, 4  ;;  %v1785_v38 = vsel %vm538_vm0, %v4101_v44, %v1784_v58  ;;  %v1758_v6 = vrot.slane %v1741_v46, 4 }
 0x182   : > { %v1793_v15 = vperm.slane %v1785_v38, %v3287_v11  ;;  %v1818_v21 = vrot.slane %v1789_v59, 4  ;;  %v4195_v0 = vsel %vm538_vm0, %v1754_v47, %v1713_v14  ;;  %v4198_v27 = vsel %vm538_vm0, %v1741_v46, %v1760_v17 }
 0x183   : > { %v1820_v57 = vrot.slane %v1777_v52, 4  ;;  %v1762_v36 = vrot.slane %v1749_v7, 4  ;;  %v4201_v4 = vsel %vm538_vm0, %v1749_v7, %v1764_v12  ;;  %v4204_v58 = vsel %vm538_vm0, %v1758_v6, %v1717_v5 }
 0x184   : > { %4910 = vst [vmem:[#allocation58_spill] sm:$0xff] %v4201_v4  ;;  %v1830_v44 = vrot.slane %v1793_v15, 4  ;;  %v4207_v51 = vsel %vm538_vm0, %v1818_v21, %v1777_v52  ;;  %v1766_v56 = vrot.slane %v1753_v43, 4  ;;  %v4214_v17 = vsel %vm538_vm0, %v1753_v43, %v1768_v13 }
 0x185   : > { %v433_v38 = vpop.permute.xlu1 %432  ;;  %v1821_v14 = vsel %vm538_vm0, %v1789_v59, %v1820_v57  ;;  %v4211_v47 = vsel %vm538_vm0, %v1762_v36, %v1725_v2  ;;  %4911 = vst [vmem:[#allocation59_spill] sm:$0xff] %v4214_v17  ;;  %v1833_v52 = vsel %vm538_vm0, %v1793_v15, %v1832_v50  ;;  %v1794_v21 = vrot.slane %v4142_v48, 4 }
 0x186   : > { %v430_v46 = vpop.permute.xlu0 %429  ;;  %v1831_v7 = vsel %vm538_vm0, %v1830_v44, %v1781_v60  ;;  %v4218_v5 = vsel %vm538_vm0, %v1766_v56, %v1729_v49  ;;  %v1808_v6 = vrot.slane %v433_v38, 4  ;;  %v1841_v36 = vperm.slane %v1833_v52, %v3314_v35 }
 0x187   : > { %v1796_v12 = vrot.slane %v430_v46, 4  ;;  %4912 = vst [vmem:[#allocation60_spill] sm:$0xff] %v4218_v5  ;;  %v1795_v2 = vsel %vm538_vm0, %v1794_v21, %v430_v46  ;;  %v4225_v57 = vpop.permute.xlu2 %462  ;;  %v4238_v46 = vperm.slane %v1821_v14, %v3314_v35 }
 0x188   : > { %v4229_v60 = vperm.slane %v1795_v2, %v3287_v11  ;;  %v1880_v2 = vrot.slane %v1841_v36, 4 }
 0x189   : > { %v1797_v59 = vsel %vm538_vm0, %v4142_v48, %v1796_v12  ;;  %v1872_v17 = vrot.slane %v4238_v46, 4 }
 0x18a   : > { %v1805_v13 = vperm.slane %v1797_v59, %v3287_v11  ;;  %v1844_v12 = vrot.slane %v4229_v60, 4 }
 0x18c   : > { %v1856_v48 = vrot.slane %v1805_v13, 4 }
 0x18d   : > { %v442_v43 = vpop.permute.xlu1 %441 }
 0x18e   : > { %2330 = vxpose.xlu0.b32.start [1/16] (narrow) %v3384_v37, 8  ;;  %v439_v49 = vpop.permute.xlu0 %438 }
 0x18f   : > { %v1806_v50 = vrot.slane %v439_v49, 4  ;;  %v1809_v15 = vsel %vm538_vm0, %v439_v49, %v1808_v6  ;;  %v1884_v6 = vrot.slane %v442_v43, 4  ;;  %v1896_v49 = vrot.slane %v4157_v61, 4  ;;  %v4250_v14 = vpop.permute.xlu2 %471 }
 0x190   : > { %v1817_v44 = vperm.slane %v1809_v15, %v3287_v11 }
 0x191   : > { %v1807_v56 = vsel %vm538_vm0, %v1806_v50, %v433_v38  ;;  %2394 = vxpose.xlu2.b32.start [1/16] (narrow) %v3374_v34, 8 }
 0x192   : > { %v4242_v37 = vperm.slane %v1807_v56, %v3287_v11  ;;  %v1854_v21 = vrot.slane %v1817_v44, 4  ;;  %v1857_v59 = vsel %vm538_vm0, %v1817_v44, %v1856_v48 }
 0x193   : > { %v1865_v52 = vperm.slane %v1857_v59, %v3314_v35 }
 0x194   : > { %v1845_v34 = vsel %vm538_vm0, %v4242_v37, %v1844_v12  ;;  %v1855_v38 = vsel %vm538_vm0, %v1854_v21, %v1805_v13  ;;  %v1837_v12 = vperm.slane %v1831_v7, %v3314_v35 }
 0x195   : > { %v451_v50 = vpop.permute.xlu1 %450  ;;  %v4253_v15 = vperm.slane %v1845_v34, %v3314_v35  ;;  %v4256_v56 = vsel %vm538_vm0, %v1865_v52, %v1880_v2  ;;  %v1861_v34 = vperm.slane %v1855_v38, %v3314_v35 }
 0x196   : > { %4913 = vst [vmem:[#allocation61_spill] sm:$0xff] %v4256_v56  ;;  %v1894_v48 = vrot.slane %v451_v50, 4  ;;  %v1897_v44 = vsel %vm538_vm0, %v451_v50, %v1896_v49  ;;  %2331 = vxpose.xlu0.b32.cont [2/16] (narrow) %v3448_v39, 8  ;;  %v448_v59 = vpop.permute.xlu0 %447  ;;  %v1878_v49 = vrot.slane %v1865_v52, 4  ;;  %v1876_v38 = vrot.slane %v1837_v12, 4 }
 0x197   : > { %v1905_v13 = vperm.slane %v1897_v44, %v3287_v11  ;;  %v1882_v21 = vrot.slane %v448_v59, 4  ;;  %v1885_v5 = vsel %vm538_vm0, %v448_v59, %v1884_v6  ;;  %v4268_v56 = vsel %vm538_vm0, %v4253_v15, %v1872_v17 }
 0x198   : > { %v1893_v2 = vperm.slane %v1885_v5, %v3287_v11  ;;  %v1895_v7 = vsel %vm538_vm0, %v1894_v48, %v4157_v61  ;;  %v1874_v59 = vrot.slane %v1861_v34, 4  ;;  %v1908_v17 = vrot.slane %v4188_v54, 4 }
 0x199   : > { %v1942_v39 = vrot.slane %v1905_v13, 4  ;;  %v1883_v50 = vsel %vm538_vm0, %v1882_v21, %v442_v43  ;;  %2395 = vxpose.xlu2.b32.cont [2/16] (narrow) %v3454_v45, 8  ;;  %v4281_v4 = vsel %vm538_vm0, %v1861_v34, %v1876_v38  ;;  %v4284_v45 = vsel %vm538_vm0, %v1878_v49, %v1841_v36  ;;  %v4296_v38 = vpop.permute.xlu2 %480 }
 0x19a   : > { %v4275_v44 = vperm.slane %v1883_v50, %v3287_v11  ;;  %v1944_v6 = vrot.slane %v1893_v2, 4  ;;  %4914 = vst [vmem:[#allocation62_spill] sm:$0xff] %v4281_v4  ;;  %v4287_v61 = vperm.slane %v1895_v7, %v3287_v11  ;;  %v4290_v48 = vsel %vm538_vm0, %v1874_v59, %v1837_v12 }
 0x19b   : > { %v1943_v5 = vsel %vm538_vm0, %v1942_v39, %v1893_v2  ;;  %4915 = vst [vmem:[#allocation63_spill] sm:$0xff] %v4284_v45  ;;  %v1918_v2 = vrot.slane %v4225_v57, 4 }
 0x19c   : > { %v1932_v52 = vrot.slane %v4275_v44, 4  ;;  %v1945_v21 = vsel %vm538_vm0, %v1905_v13, %v1944_v6 }
 0x19d   : > { %v460_v43 = vpop.permute.xlu1 %459 }
 0x19e   : > { %v1906_v39 = vrot.slane %v460_v43, 4  ;;  %v1909_v50 = vsel %vm538_vm0, %v460_v43, %v1908_v17  ;;  %2332 = vxpose.xlu0.b32.cont [3/16] (narrow) %v3543_v29, 8  ;;  %v457_v34 = vpop.permute.xlu0 %456  ;;  %v1933_v7 = vsel %vm538_vm0, %v4287_v61, %v1932_v52 }
 0x19f   : > { %v1917_v36 = vperm.slane %v1909_v50, %v3287_v11  ;;  %v1920_v49 = vrot.slane %v457_v34, 4  ;;  %v1919_v13 = vsel %vm538_vm0, %v1918_v2, %v457_v34  ;;  %v4313_v52 = vperm.slane %v1933_v7, %v3314_v35 }
 0x1a0   : > { %v1907_v12 = vsel %vm538_vm0, %v1906_v39, %v4188_v54  ;;  %2362 = vxpose.xlu1.b32.start [1/16] (narrow) %v3377_v3, 8  ;;  %v4317_v43 = vperm.slane %v1919_v13, %v3287_v11  ;;  %v1953_v3 = vperm.slane %v1945_v21, %v3314_v35 }
 0x1a1   : > { %v4306_v6 = vperm.slane %v1907_v12, %v3287_v11  ;;  %v1968_v29 = vrot.slane %v1917_v36, 4  ;;  %v1921_v59 = vsel %vm538_vm0, %v4225_v57, %v1920_v49  ;;  %2396 = vxpose.xlu2.b32.cont [3/16] (narrow) %v3558_v33, 8  ;;  %v1949_v33 = vperm.slane %v1943_v5, %v3314_v35 }
 0x1a2   : > { %v1929_v17 = vperm.slane %v1921_v59, %v3287_v11  ;;  %v1984_v12 = vrot.slane %v4313_v52, 4 }
 0x1a3   : > { %v1956_v54 = vrot.slane %v4306_v6, 4 }
 0x1a4   : > { %v1966_v2 = vrot.slane %v1929_v17, 4  ;;  %v1969_v39 = vsel %vm538_vm0, %v1929_v17, %v1968_v29  ;;  %v1992_v29 = vrot.slane %v1953_v3, 4  ;;  %v4337_v17 = vpop.permute.xlu2 %489 }
 0x1a5   : > { %v1957_v57 = vsel %vm538_vm0, %v4317_v43, %v1956_v54  ;;  %v469_v50 = vpop.permute.xlu1 %468  ;;  %v1977_v34 = vperm.slane %v1969_v39, %v3314_v35  ;;  %v1988_v54 = vrot.slane %v1949_v33, 4 }
 0x1a6   : > { %2333 = vxpose.xlu0.b32.cont [4/16] (narrow) %v3641_v53, 8  ;;  %v466_v49 = vpop.permute.xlu0 %465  ;;  %v4327_v7 = vperm.slane %v1957_v57, %v3314_v35  ;;  %v1967_v21 = vsel %vm538_vm0, %v1966_v2, %v1917_v36 }
 0x1a7   : > { %v1996_v13 = vrot.slane %v466_v49, 4  ;;  %v1973_v5 = vperm.slane %v1967_v21, %v3314_v35  ;;  %v1990_v39 = vrot.slane %v1977_v34, 4  ;;  %v4343_v36 = vsel %vm538_vm0, %v1977_v34, %v1992_v29 }
 0x1a8   : > { %2363 = vxpose.xlu1.b32.cont [2/16] (narrow) %v3439_v30, 8  ;;  %v4334_v59 = vsel %vm538_vm0, %v4327_v7, %v1984_v12  ;;  %4916 = vst [vmem:[#allocation64_spill] sm:$0xff] %v4343_v36  ;;  %v2008_v30 = vrot.slane %v469_v50, 4  ;;  %v1994_v34 = vrot.slane %v4250_v14, 4 }
 0x1a9   : > { %v1997_v53 = vsel %vm538_vm0, %v4250_v14, %v1996_v13  ;;  %2397 = vxpose.xlu2.b32.cont [4/16] (narrow) %v3631_v55, 8  ;;  %v1986_v2 = vrot.slane %v1973_v5, 4  ;;  %v4346_v57 = vsel %vm538_vm0, %v1973_v5, %v1988_v54  ;;  %v4349_v12 = vsel %vm538_vm0, %v1990_v39, %v1953_v3 }
 0x1aa   : > { %4917 = vst [vmem:[#allocation65_spill] sm:$0xff] %v4349_v12  ;;  %v2005_v21 = vperm.slane %v1997_v53, %v3287_v11  ;;  %v1995_v3 = vsel %vm538_vm0, %v1994_v34, %v466_v49  ;;  %v2032_v39 = vrot.slane %v4296_v38, 4 }
 0x1ab   : > { %v4353_v45 = vsel %vm538_vm0, %v1986_v2, %v1949_v33  ;;  %v4368_v2 = vperm.slane %v1995_v3, %v3287_v11 }
 0x1ac   : > { %v2056_v4 = vrot.slane %v2005_v21, 4  ;;  %v4363_v54 = vpop.permute.xlu2 %498 }
 0x1ad   : > { %v478_v13 = vpop.permute.xlu1 %477 }
 0x1ae   : > { %2334 = vxpose.xlu0.b32.cont [5/16] (narrow) %v3703_v1, 8  ;;  %v475_v55 = vpop.permute.xlu0 %474  ;;  %v2020_v1 = vrot.slane %v478_v13, 4 }
 0x1af   : > { %v2006_v29 = vrot.slane %v475_v55, 4  ;;  %v2009_v36 = vsel %vm538_vm0, %v475_v55, %v2008_v30 }
 0x1b0   : > { %v2017_v5 = vperm.slane %v2009_v36, %v3287_v11  ;;  %2364 = vxpose.xlu1.b32.cont [3/16] (narrow) %v3539_v23, 8 }
 0x1b1   : > { %2398 = vxpose.xlu2.b32.cont [5/16] (narrow) %v3709_v28, 8  ;;  %v2007_v14 = vsel %vm538_vm0, %v2006_v29, %v469_v50  ;;  %v2044_v29 = vrot.slane %v4368_v2, 4 }
 0x1b2   : > { %v2054_v33 = vrot.slane %v2017_v5, 4  ;;  %v2057_v53 = vsel %vm538_vm0, %v2017_v5, %v2056_v4  ;;  %v4372_v49 = vperm.slane %v2007_v14, %v3287_v11 }
 0x1b4   : > { %v2055_v36 = vsel %vm538_vm0, %v2054_v33, %v2005_v21 }
 0x1b5   : > { %v487_v23 = vpop.permute.xlu1 %486 }
 0x1b6   : > { %v2030_v28 = vrot.slane %v487_v23, 4  ;;  %v2033_v30 = vsel %vm538_vm0, %v487_v23, %v2032_v39  ;;  %2335 = vxpose.xlu0.b32.cont [6/16] (narrow) %v3792_v18, 8  ;;  %v484_v4 = vpop.permute.xlu0 %483  ;;  %v2108_v23 = vrot.slane %v4337_v17, 4 }
 0x1b7   : > { %v2041_v55 = vperm.slane %v2033_v30, %v3287_v11  ;;  %v2018_v50 = vrot.slane %v484_v4, 4  ;;  %v2021_v34 = vsel %vm538_vm0, %v484_v4, %v2020_v1  ;;  %v2045_v1 = vsel %vm538_vm0, %v4372_v49, %v2044_v29  ;;  %v508_v30 = vpop.permute.xlu2 %507 }
 0x1b8   : > { %v2029_v5 = vperm.slane %v2021_v34, %v3287_v11  ;;  %2365 = vxpose.xlu1.b32.cont [4/16] (narrow) %v3634_v10, 8  ;;  %v2031_v18 = vsel %vm538_vm0, %v2030_v28, %v4296_v38  ;;  %v4398_v28 = vperm.slane %v2045_v1, %v3314_v35  ;;  %v2061_v4 = vperm.slane %v2055_v36, %v3314_v35 }
 0x1b9   : > { %v2078_v21 = vrot.slane %v2041_v55, 4  ;;  %v2019_v3 = vsel %vm538_vm0, %v2018_v50, %v478_v13  ;;  %2399 = vxpose.xlu2.b32.cont [6/16] (narrow) %v3807_v22, 8  ;;  %v4395_v22 = vperm.slane %v2031_v18, %v3287_v11  ;;  %v2065_v29 = vperm.slane %v2057_v53, %v3314_v35 }
 0x1ba   : > { %v4386_v33 = vperm.slane %v2019_v3, %v3287_v11  ;;  %v2080_v14 = vrot.slane %v2029_v5, 4  ;;  %v2096_v53 = vrot.slane %v4398_v28, 4  ;;  %v2100_v1 = vrot.slane %v2061_v4, 4 }
 0x1bb   : > { %v2079_v39 = vsel %vm538_vm0, %v2078_v21, %v2029_v5 }
 0x1bc   : > { %v2068_v10 = vrot.slane %v4386_v33, 4  ;;  %v2081_v13 = vsel %vm538_vm0, %v2041_v55, %v2080_v14  ;;  %v2085_v3 = vperm.slane %v2079_v39, %v3314_v35  ;;  %v2104_v39 = vrot.slane %v2065_v29, 4 }
 0x1bd   : > { %v496_v38 = vpop.permute.xlu1 %495  ;;  %v2089_v14 = vperm.slane %v2081_v13, %v3314_v35 }
 0x1be   : > { %v2109_v50 = vsel %vm538_vm0, %v496_v38, %v2108_v23  ;;  %2336 = vxpose.xlu0.b32.cont [7/16] (narrow) %v3889_v63, 8  ;;  %v493_v34 = vpop.permute.xlu0 %492  ;;  %v2106_v5 = vrot.slane %v496_v38, 4  ;;  %v2069_v55 = vsel %vm538_vm0, %v4395_v22, %v2068_v10  ;;  %v2098_v38 = vrot.slane %v2085_v3, 4 }
 0x1bf   : > { %v2120_v21 = vrot.slane %v493_v34, 4  ;;  %v2117_v18 = vperm.slane %v2109_v50, %v3287_v11  ;;  %v4410_v36 = vperm.slane %v2069_v55, %v3314_v35  ;;  %v4425_v13 = vsel %vm538_vm0, %v2085_v3, %v2100_v1  ;;  %v517_v1 = vpop.permute.xlu2 %516 }
 0x1c0   : > { %2366 = vxpose.xlu1.b32.cont [5/16] (narrow) %v3694_v40, 8  ;;  %v2107_v10 = vsel %vm538_vm0, %v2106_v5, %v4337_v17  ;;  %4918 = vst [vmem:[#allocation66_spill] sm:$0xff] %v4425_v13  ;;  %v4428_v12 = vsel %vm538_vm0, %v2098_v38, %v2061_v4  ;;  %v2118_v3 = vrot.slane %v4363_v54, 4 }
 0x1c1   : > { %v2121_v63 = vsel %vm538_vm0, %v4363_v54, %v2120_v21  ;;  %2400 = vxpose.xlu2.b32.cont [7/16] (narrow) %v3879_v20, 8  ;;  %v4422_v40 = vsel %vm538_vm0, %v4410_v36, %v2096_v53  ;;  %v2168_v50 = vrot.slane %v2117_v18, 4  ;;  %v2102_v20 = vrot.slane %v2089_v14, 4 }
 0x1c2   : > { %v2129_v23 = vperm.slane %v2121_v63, %v3287_v11  ;;  %v4431_v63 = vsel %vm538_vm0, %v2089_v14, %v2104_v39  ;;  %v4434_v17 = vperm.slane %v2107_v10, %v3287_v11  ;;  %v2130_v39 = vrot.slane %v508_v30, 4 }
 0x1c3   : > { %4919 = vst [vmem:[#allocation67_spill] sm:$0xff] %v4431_v63  ;;  %v4441_v4 = vsel %vm538_vm0, %v2102_v20, %v2065_v29  ;;  %v2119_v10 = vsel %vm538_vm0, %v2118_v3, %v493_v34 }
 0x1c4   : > { %v2166_v21 = vrot.slane %v2129_v23, 4  ;;  %4920 = vst [vmem:[#allocation68_spill] sm:$0xff] %v4441_v4  ;;  %v2169_v14 = vsel %vm538_vm0, %v2129_v23, %v2168_v50 }
 0x1c5   : > { %v505_v55 = vpop.permute.xlu1 %504  ;;  %v2177_v50 = vperm.slane %v2169_v14, %v3314_v35 }
 0x1c6   : > { %2337 = vxpose.xlu0.b32.cont [8/16] (narrow) %v3953_v9, 8  ;;  %v502_v5 = vpop.permute.xlu0 %501  ;;  %v2167_v53 = vsel %vm538_vm0, %v2166_v21, %v2117_v18  ;;  %v2156_v9 = vrot.slane %v4434_v17, 4  ;;  %v2144_v18 = vrot.slane %v505_v55, 4  ;;  %v4450_v21 = vperm.slane %v2119_v10, %v3287_v11 }
 0x1c7   : > { %v2132_v13 = vrot.slane %v502_v5, 4  ;;  %v2131_v54 = vsel %vm538_vm0, %v2130_v39, %v502_v5  ;;  %v526_v3 = vpop.permute.xlu2 %525  ;;  %v2173_v63 = vperm.slane %v2167_v53, %v3314_v35 }
 0x1c8   : > { %2367 = vxpose.xlu1.b32.cont [6/16] (narrow) %v3788_v41, 8  ;;  %v4454_v23 = vperm.slane %v2131_v54, %v3287_v11 }
 0x1c9   : > { %v2133_v38 = vsel %vm538_vm0, %v508_v30, %v2132_v13  ;;  %2401 = vxpose.xlu2.b32.cont [8/16] (narrow) %v3957_v25, 8  ;;  %v2157_v25 = vsel %vm538_vm0, %v4450_v21, %v2156_v9 }
 0x1ca   : > { %v2141_v41 = vperm.slane %v2133_v38, %v3287_v11  ;;  %v2180_v10 = vrot.slane %v4454_v23, 4 }
 0x1cc   : > { %v2192_v20 = vrot.slane %v2141_v41, 4 }
 0x1cd   : > { %v514_v29 = vpop.permute.xlu1 %513 }
 0x1ce   : > { %2338 = vxpose.xlu0.b32.cont [9/16] (narrow) %v4056_v24, 8  ;;  %v511_v34 = vpop.permute.xlu0 %510  ;;  %v4466_v24 = vperm.slane %v2157_v25, %v3314_v35 }
 0x1cf   : > { %v2142_v30 = vrot.slane %v511_v34, 4  ;;  %v2145_v13 = vsel %vm538_vm0, %v511_v34, %v2144_v18  ;;  %v2220_v18 = vrot.slane %v514_v29, 4  ;;  %v1842_v34 = vrot.slane %v4242_v37, 4 }
 0x1d0   : > { %v2153_v5 = vperm.slane %v2145_v13, %v3287_v11  ;;  %2368 = vxpose.xlu1.b32.cont [7/16] (narrow) %v3882_v31, 8  ;;  %v2216_v31 = vrot.slane %v2177_v50, 4  ;;  %v2208_v37 = vrot.slane %v4466_v24, 4 }
 0x1d1   : > { %v2143_v39 = vsel %vm538_vm0, %v2142_v30, %v505_v55  ;;  %2402 = vxpose.xlu2.b32.cont [9/16] (narrow) %v4046_v19, 8  ;;  %v2232_v55 = vrot.slane %v517_v1, 4 }
 0x1d2   : > { %v4470_v38 = vperm.slane %v2143_v39, %v3287_v11  ;;  %v2190_v9 = vrot.slane %v2153_v5, 4  ;;  %v2193_v14 = vsel %vm538_vm0, %v2153_v5, %v2192_v20 }
 0x1d3   : > { %v2201_v54 = vperm.slane %v2193_v14, %v3314_v35 }
 0x1d4   : > { %v2181_v19 = vsel %vm538_vm0, %v4470_v38, %v2180_v10  ;;  %v2191_v25 = vsel %vm538_vm0, %v2190_v9, %v2141_v41 }
 0x1d5   : > { %v523_v30 = vpop.permute.xlu1 %522  ;;  %v4479_v13 = vperm.slane %v2181_v19, %v3314_v35  ;;  %v4482_v39 = vsel %vm538_vm0, %v2201_v54, %v2216_v31  ;;  %v2197_v19 = vperm.slane %v2191_v25, %v3314_v35 }
 0x1d6   : > { %4921 = vst [vmem:[#allocation69_spill] sm:$0xff] %v4482_v39  ;;  %v2230_v20 = vrot.slane %v523_v30, 4  ;;  %v2233_v5 = vsel %vm538_vm0, %v523_v30, %v2232_v55  ;;  %2339 = vxpose.xlu0.b32.cont [10/16] (narrow) %v4118_v16, 8  ;;  %v520_v14 = vpop.permute.xlu0 %519  ;;  %v1843_v55 = vsel %vm538_vm0, %v1842_v34, %v4229_v60  ;;  %v2214_v30 = vrot.slane %v2201_v54, 4 }
 0x1d7   : > { %v2241_v10 = vperm.slane %v2233_v5, %v3287_v11  ;;  %v2218_v41 = vrot.slane %v520_v14, 4  ;;  %v2221_v9 = vsel %vm538_vm0, %v520_v14, %v2220_v18  ;;  %v4497_v16 = vsel %vm538_vm0, %v4479_v13, %v2208_v37 }
 0x1d8   : > { %v2229_v31 = vperm.slane %v2221_v9, %v3287_v11  ;;  %2369 = vxpose.xlu1.b32.cont [8/16] (narrow) %v3947_v42, 8  ;;  %v2231_v18 = vsel %vm538_vm0, %v2230_v20, %v517_v1  ;;  %v2212_v42 = vrot.slane %v2173_v63, 4  ;;  %v535_v9 = vpop.permute.xlu2 %534  ;;  %v4506_v60 = vperm.slane %v1843_v55, %v3314_v35 }
 0x1d9   : > { %v2278_v53 = vrot.slane %v2241_v10, 4  ;;  %v2219_v5 = vsel %vm538_vm0, %v2218_v41, %v514_v29  ;;  %2403 = vxpose.xlu2.b32.cont [10/16] (narrow) %v4124_v26, 8  ;;  %v2210_v34 = vrot.slane %v2197_v19, 4  ;;  %v2244_v54 = vrot.slane %v526_v3, 4 }
 0x1da   : > { %v4503_v25 = vperm.slane %v2219_v5, %v3287_v11  ;;  %v2280_v14 = vrot.slane %v2229_v31, 4  ;;  %v4511_v29 = vsel %vm538_vm0, %v2197_v19, %v2212_v42  ;;  %v4514_v26 = vsel %vm538_vm0, %v2214_v30, %v2177_v50 }
 0x1db   : > { %v2279_v37 = vsel %vm538_vm0, %v2278_v53, %v2229_v31  ;;  %v4517_v1 = vperm.slane %v2231_v18, %v3287_v11  ;;  %v4520_v41 = vsel %vm538_vm0, %v2210_v34, %v2173_v63  ;;  %v1954_v31 = vrot.slane %v4317_v43, 4 }
 0x1dc   : > { %v2268_v39 = vrot.slane %v4503_v25, 4  ;;  %v2281_v55 = vsel %vm538_vm0, %v2241_v10, %v2280_v14  ;;  %v2254_v53 = vrot.slane %v535_v9, 4  ;;  %v1866_v43 = vrot.slane %v4506_v60, 4 }
 0x1dd   : > { %v532_v20 = vpop.permute.xlu1 %531  ;;  %v2289_v34 = vperm.slane %v2281_v55, %v3314_v35 }
 0x1de   : > { %v2242_v5 = vrot.slane %v532_v20, 4  ;;  %v2245_v4 = vsel %vm538_vm0, %v532_v20, %v2244_v54  ;;  %2340 = vxpose.xlu0.b32.cont [11/16] (narrow) %v4195_v0, 8  ;;  %v529_v19 = vpop.permute.xlu0 %528  ;;  %v2269_v18 = vsel %vm538_vm0, %v4517_v1, %v2268_v39 }
 0x1df   : > { %v2253_v50 = vperm.slane %v2245_v4, %v3287_v11  ;;  %v2256_v30 = vrot.slane %v529_v19, 4  ;;  %v2255_v42 = vsel %vm538_vm0, %v2254_v53, %v529_v19  ;;  %v1825_v4 = vperm.slane %v4207_v51, %v3314_v35 }
 0x1e0   : > { %v2243_v63 = vsel %vm538_vm0, %v2242_v5, %v526_v3  ;;  %2370 = vxpose.xlu1.b32.cont [9/16] (narrow) %v4049_v8, 8  ;;  %v1955_v3 = vsel %vm538_vm0, %v1954_v31, %v4306_v6  ;;  %v4544_v8 = vperm.slane %v2269_v18, %v3314_v35  ;;  %v2261_v20 = vperm.slane %v2255_v42, %v3287_v11 }
 0x1e1   : > { %v4534_v10 = vperm.slane %v2243_v63, %v3287_v11  ;;  %v2304_v14 = vrot.slane %v2253_v50, 4  ;;  %v2257_v0 = vsel %vm538_vm0, %v535_v9, %v2256_v30  ;;  %2404 = vxpose.xlu2.b32.cont [11/16] (narrow) %v4204_v58, 8  ;;  %v1870_v9 = vrot.slane %v4253_v15, 4 }
 0x1e2   : > { %v2265_v39 = vperm.slane %v2257_v0, %v3287_v11  ;;  %v2285_v58 = vperm.slane %v2279_v37, %v3314_v35  ;;  %v1930_v51 = vrot.slane %v4287_v61, 4  ;;  %v1867_v5 = vsel %vm538_vm0, %v1866_v43, %v1825_v4 }
 0x1e3   : > { %v2292_v54 = vrot.slane %v4534_v10, 4  ;;  %v2066_v31 = vrot.slane %v4395_v22, 4  ;;  %v1961_v55 = vperm.slane %v1955_v3, %v3314_v35  ;;  %v2320_v15 = vrot.slane %v4544_v8, 4 }
 0x1e4   : > { %v2302_v53 = vrot.slane %v2265_v39, 4  ;;  %v2305_v6 = vsel %vm538_vm0, %v2265_v39, %v2304_v14  ;;  %v2328_v37 = vrot.slane %v2289_v34, 4  ;;  %v2324_v63 = vrot.slane %v2285_v58, 4 }
 0x1e5   : > { %v2293_v19 = vsel %vm538_vm0, %v2261_v20, %v2292_v54  ;;  %v2313_v30 = vperm.slane %v2305_v6, %v3314_v35  ;;  %v1871_v22 = vsel %vm538_vm0, %v1870_v9, %v4238_v46  ;;  %v1931_v43 = vsel %vm538_vm0, %v1930_v51, %v4275_v44 }
 0x1e6   : > { %2341 = vxpose.xlu0.b32.cont [12/16] (narrow) %v1867_v5, 8  ;;  %v4559_v11 = vperm.slane %v2293_v19, %v3314_v35  ;;  %v2303_v61 = vsel %vm538_vm0, %v2302_v53, %v2253_v50  ;;  %v1978_v50 = vrot.slane %v1961_v55, 4  ;;  %v2067_v46 = vsel %vm538_vm0, %v2066_v31, %v4386_v33 }
 0x1e7   : > { %v2309_v18 = vperm.slane %v2303_v61, %v3314_v35  ;;  %v2326_v42 = vrot.slane %v2313_v30, 4  ;;  %v4574_v0 = vsel %vm538_vm0, %v2313_v30, %v2328_v37  ;;  %v1937_v44 = vperm.slane %v1931_v43, %v3314_v35 }
 0x1e8   : > { %2371 = vxpose.xlu1.b32.cont [10/16] (narrow) %v4109_v62, 8  ;;  %v4571_v14 = vsel %vm538_vm0, %v4559_v11, %v2320_v15  ;;  %v2042_v9 = vrot.slane %v4372_v49, 4  ;;  %v1982_v51 = vrot.slane %v4327_v7, 4  ;;  %v2073_v5 = vperm.slane %v2067_v46, %v3314_v35 }
 0x1e9   : > { %2405 = vxpose.xlu2.b32.cont [12/16] (narrow) %v1871_v22, 8  ;;  %v2322_v39 = vrot.slane %v2309_v18, 4  ;;  %v4577_v3 = vsel %vm538_vm0, %v2309_v18, %v2324_v63  ;;  %v4580_v62 = vsel %vm538_vm0, %v2326_v42, %v2289_v34  ;;  %v1979_v53 = vsel %vm538_vm0, %v1978_v50, %v1937_v44  ;;  %v4922_v50 = vld [vmem:[#allocation9_spill] sm:$0xff] }
 0x1ea   : > { %v2178_v6 = vrot.slane %v4470_v38, 4  ;;  %v1983_v33 = vsel %vm538_vm0, %v1982_v51, %v4313_v52  ;;  %v2043_v34 = vsel %vm538_vm0, %v2042_v9, %v4368_v2  ;;  %v2154_v31 = vrot.slane %v4450_v21, 4  ;;  %v4926_v9 = vld [vmem:[#allocation18_spill] sm:$0xff]  ;;  %v4928_v51 = vld [vmem:[#allocation20_spill] sm:$0xff] }
 0x1eb   : > { %v4586_v54 = vsel %vm538_vm0, %v2322_v39, %v2285_v58  ;;  %v2090_v58 = vrot.slane %v2073_v5, 4  ;;  %v2049_v49 = vperm.slane %v2043_v34, %v3314_v35  ;;  %v2094_v38 = vrot.slane %v4410_v36, 4  ;;  %v4924_v39 = vld [vmem:[#allocation13_spill] sm:$0xff]  ;;  %v4933_v34 = vld [vmem:[#allocation19_spill] sm:$0xff] }
 0x1ec   : > { %v2179_v7 = vsel %vm538_vm0, %v2178_v6, %v4454_v23  ;;  %v2290_v52 = vrot.slane %v2261_v20, 4  ;;  %v2155_v15 = vsel %vm538_vm0, %v2154_v31, %v4434_v17  ;;  %v2266_v20 = vrot.slane %v4517_v1, 4  ;;  %v4931_v6 = vld [vmem:[#allocation27_spill] sm:$0xff] }
 0x1ed   : > { %v2091_v19 = vsel %vm538_vm0, %v2090_v58, %v2049_v49  ;;  %v2185_v30 = vperm.slane %v2179_v7, %v3314_v35  ;;  %v2095_v23 = vsel %vm538_vm0, %v2094_v38, %v4398_v28  ;;  %v2206_v61 = vrot.slane %v4479_v13, 4  ;;  %v4934_v58 = vld [vmem:[#allocation32_spill] sm:$0xff]  ;;  %v4935_v7 = vld [vmem:[#allocation33_spill] sm:$0xff]  ;;  %v4937_v31 = vld [vmem:[#allocation35_spill] sm:$0xff] }
 0x1ee   : > { %2342 = vxpose.xlu0.b32.cont [13/16] (narrow) %v1979_v53, 8  ;;  %v2291_v36 = vsel %vm538_vm0, %v2290_v52, %v4534_v10  ;;  %v1980_v37 = vrot.slane %v1937_v44, 4  ;;  %v2267_v10 = vsel %vm538_vm0, %v2266_v20, %v4503_v25  ;;  %v2318_v13 = vrot.slane %v4559_v11, 4  ;;  %v4925_v44 = vld [vmem:[#allocation17_spill] sm:$0xff]  ;;  %v4929_v53 = vld [vmem:[#allocation24_spill] sm:$0xff]  ;;  %v4938_v38 = vld [vmem:[#allocation39_spill] sm:$0xff] }
 0x1ef   : > { %v2202_v21 = vrot.slane %v2185_v30, 4  ;;  %v2297_v18 = vperm.slane %v2291_v36, %v3314_v35  ;;  %v2207_v17 = vsel %vm538_vm0, %v2206_v61, %v4466_v24  ;;  %v2273_v1 = vperm.slane %v2267_v10, %v3314_v35  ;;  %v4942_v52 = vld [vmem:[#allocation34_spill] sm:$0xff]  ;;  %v4947_v36 = vld [vmem:[#allocation53_spill] sm:$0xff]  ;;  %v4971_v10 = vld [vmem:[#allocation51_spill] sm:$0xff] }
 0x1f0   : > { %2372 = vxpose.xlu1.b32.cont [11/16] (narrow) %v4191_v32, 8  ;;  %v1868_v32 = vrot.slane %v1825_v4, 4  ;;  %v2161_v4 = vperm.slane %v2155_v15, %v3314_v35  ;;  %v1981_v28 = vsel %vm538_vm0, %v1961_v55, %v1980_v37  ;;  %v2092_v22 = vrot.slane %v2049_v49, 4  ;;  %v4923_v35 = vld [vmem:[#allocation12_spill] sm:$0xff]  ;;  %v4936_v49 = vld [vmem:[#allocation25_spill] sm:$0xff]  ;;  %v4950_v61 = vld [vmem:[#allocation50_spill] sm:$0xff] }
 0x1f1   : > { %2406 = vxpose.xlu2.b32.cont [13/16] (narrow) %v1983_v33, 8  ;;  %v2314_v63 = vrot.slane %v2297_v18, 4  ;;  %v2319_v55 = vsel %vm538_vm0, %v2318_v13, %v4544_v8  ;;  %v2316_v11 = vrot.slane %v2273_v1, 4  ;;  %v4927_v8 = vld [vmem:[#allocation10_spill] sm:$0xff]  ;;  %v4932_v33 = vld [vmem:[#allocation28_spill] sm:$0xff]  ;;  %v4949_v20 = vld [vmem:[#allocation57_spill] sm:$0xff] }
 0x1f2   : > { %v1869_v2 = vsel %vm538_vm0, %v4506_v60, %v1868_v32  ;;  %v2203_v60 = vsel %vm538_vm0, %v2202_v21, %v2161_v4  ;;  %v2093_v43 = vsel %vm538_vm0, %v2073_v5, %v2092_v22  ;;  %v2204_v24 = vrot.slane %v2161_v4, 4  ;;  %v4930_v5 = vld [vmem:[#allocation15_spill] sm:$0xff]  ;;  %v4940_v32 = vld [vmem:[#allocation42_spill] sm:$0xff]  ;;  %v4945_v15 = vld [vmem:[#allocation40_spill] sm:$0xff] }
 0x1f3   : > { %v2315_v42 = vsel %vm538_vm0, %v2314_v63, %v2273_v1  ;;  %v2317_v46 = vsel %vm538_vm0, %v2297_v18, %v2316_v11  ;;  %v4946_v21 = vld [vmem:[#allocation52_spill] sm:$0xff]  ;;  %v4948_v4 = vld [vmem:[#allocation47_spill] sm:$0xff]  ;;  %v4952_v37 = vld [vmem:[#allocation58_spill] sm:$0xff] }
 0x1f4   : > { %v2205_v25 = vsel %vm538_vm0, %v2185_v30, %v2204_v24  ;;  %v4941_v30 = vld [vmem:[#allocation43_spill] sm:$0xff]  ;;  %v4953_v18 = vld [vmem:[#allocation62_spill] sm:$0xff]  ;;  %v4972_v63 = vld [vmem:[#allocation48_spill] sm:$0xff] }
 0x1f5   : > { %v4973_v1 = vld [vmem:[#allocation56_spill] sm:$0xff]  ;;  %v4974_v13 = vld [vmem:[#allocation54_spill] sm:$0xff]  ;;  %v4976_v22 = vld [vmem:[#allocation59_spill] sm:$0xff] }
 0x1f6   : > { %2343 = vxpose.xlu0.b32.cont [14/16] (narrow) %v2091_v19, 8  ;;  %v4939_v19 = vld [vmem:[#allocation30_spill] sm:$0xff] }
 0x1f8   : > { %2373 = vxpose.xlu1.b32.cont [12/16] (narrow) %v1869_v2, 8  ;;  %v4943_v2 = vld [vmem:[#allocation46_spill] sm:$0xff] }
 0x1f9   : > { %2407 = vxpose.xlu2.b32.cont [14/16] (narrow) %v2095_v23, 8  ;;  %v4944_v23 = vld [vmem:[#allocation49_spill] sm:$0xff] }
 0x1fe   : > { %2344 = vxpose.xlu0.b32.cont [15/16] (narrow) %v2203_v60, 8  ;;  %v4951_v60 = vld [vmem:[#allocation55_spill] sm:$0xff] }
 0x200   : > { %2374 = vxpose.xlu1.b32.cont [13/16] (narrow) %v1981_v28, 8  ;;  %v4969_v28 = vld [vmem:[#allocation45_spill] sm:$0xff] }
 0x201   : > { %2408 = vxpose.xlu2.b32.cont [15/16] (narrow) %v2207_v17, 8  ;;  %v4970_v17 = vld [vmem:[#allocation44_spill] sm:$0xff] }
 0x206   : > { %2345 = vxpose.xlu0.b32.end [16/16] (narrow) %v2315_v42, 8  ;;  %v4975_v42 = vld [vmem:[#allocation60_spill] sm:$0xff] }
 0x208   : > { %2375 = vxpose.xlu1.b32.cont [14/16] (narrow) %v2093_v43, 8  ;;  %v4977_v43 = vld [vmem:[#allocation63_spill] sm:$0xff] }
 0x209   : > { %2409 = vxpose.xlu2.b32.end [16/16] (narrow) %v2319_v55, 8  ;;  %v4978_v55 = vld [vmem:[#allocation61_spill] sm:$0xff] }
 0x20e   : > { %2426 = vxpose.xlu0.b32.start [1/16] (narrow) %v4922_v50, 8 }
 0x210   : > { %2376 = vxpose.xlu1.b32.cont [15/16] (narrow) %v2205_v25, 8 }
 0x211   : > { %2458 = vxpose.xlu2.b32.start [1/16] (narrow) %v4923_v35, 8 }
 0x216   : > { %2427 = vxpose.xlu0.b32.cont [2/16] (narrow) %v4924_v39, 8 }
 0x218   : > { %2377 = vxpose.xlu1.b32.end [16/16] (narrow) %v2317_v46, 8 }
 0x219   : > { %2459 = vxpose.xlu2.b32.cont [2/16] (narrow) %v4925_v44, 8 }
 0x21e   : > { %2428 = vxpose.xlu0.b32.cont [3/16] (narrow) %v4926_v9, 8 }
 0x220   : > { %2490 = vxpose.xlu1.b32.start [1/16] (narrow) %v4927_v8, 8 }
 0x221   : > { %2460 = vxpose.xlu2.b32.cont [3/16] (narrow) %v4928_v51, 8 }
 0x226   : > { %2429 = vxpose.xlu0.b32.cont [4/16] (narrow) %v4929_v53, 8 }
 0x228   : > { %2491 = vxpose.xlu1.b32.cont [2/16] (narrow) %v4930_v5, 8  ;;  %v4979_v5 = vld [vmem:[#allocation65_spill] sm:$0xff] }
 0x229   : > { %2461 = vxpose.xlu2.b32.cont [4/16] (narrow) %v4931_v6, 8  ;;  %v4980_v6 = vld [vmem:[#allocation64_spill] sm:$0xff] }
 0x22a   : > { %v2410_v24 = vpop.trf.xlu2 }
 0x22b   : > { %v2596_v25 = vrot.slane %v2410_v24, 1  ;;  %v2606_v35 = vperm.slane %v2410_v24, 0 }
 0x22d   : > { %v2607_v9 = vperm.slane %v2596_v25, 0  ;;  %2626 = vst [vmem:[#allocation1 + $0x20] ss:$2 sm:$0xff] %v2606_v35 }
 0x22e   : > { %2430 = vxpose.xlu0.b32.cont [5/16] (narrow) %v4932_v33, 8 }
 0x22f   : > { %2628 = vst [vmem:[#allocation1 + $0x21] ss:$2 sm:$0xff] %v2607_v9 }
 0x230   : > { %2492 = vxpose.xlu1.b32.cont [3/16] (narrow) %v4933_v34, 8 }
 0x231   : > { %2462 = vxpose.xlu2.b32.cont [5/16] (narrow) %v4934_v58, 8 }
 0x232   : > { %v2346_v50 = vpop.trf.xlu0 }
 0x233   : > { %v2594_v11 = vrot.slane %v2346_v50, 1  ;;  %v2602_v39 = vperm.slane %v2346_v50, 0 }
 0x235   : > { %v2603_v8 = vperm.slane %v2594_v11, 0  ;;  %2618 = vst [vmem:[#allocation1] ss:$2 sm:$0xff] %v2602_v39 }
 0x236   : > { %2431 = vxpose.xlu0.b32.cont [6/16] (narrow) %v4935_v7, 8 }
 0x237   : > { %2620 = vst [vmem:[#allocation1 + $0x1] ss:$2 sm:$0xff] %v2603_v8 }
 0x238   : > { %2493 = vxpose.xlu1.b32.cont [4/16] (narrow) %v4936_v49, 8 }
 0x239   : > { %2463 = vxpose.xlu2.b32.cont [6/16] (narrow) %v4937_v31, 8 }
 0x23e   : > { %2432 = vxpose.xlu0.b32.cont [7/16] (narrow) %v4938_v38, 8 }
 0x240   : > { %2494 = vxpose.xlu1.b32.cont [5/16] (narrow) %v4939_v19, 8 }
 0x241   : > { %2464 = vxpose.xlu2.b32.cont [7/16] (narrow) %v4940_v32, 8 }
 0x244   : > { %v2378_v46 = vpop.trf.xlu1 }
 0x245   : > { %v2595_v44 = vrot.slane %v2378_v46, 1  ;;  %v2604_v51 = vperm.slane %v2378_v46, 0 }
 0x246   : > { %2433 = vxpose.xlu0.b32.cont [8/16] (narrow) %v4941_v30, 8 }
 0x247   : > { %v2605_v53 = vperm.slane %v2595_v44, 0  ;;  %2622 = vst [vmem:[#allocation1 + $0x10] ss:$2 sm:$0xff] %v2604_v51 }
 0x248   : > { %2495 = vxpose.xlu1.b32.cont [6/16] (narrow) %v4942_v52, 8  ;;  %v4981_v52 = vld [vmem:[#allocation68_spill] sm:$0xff] }
 0x249   : > { %2465 = vxpose.xlu2.b32.cont [8/16] (narrow) %v4943_v2, 8  ;;  %2624 = vst [vmem:[#allocation1 + $0x11] ss:$2 sm:$0xff] %v2605_v53  ;;  %v2633_v2 = vld.sshfl [vmem:[#allocation1] sm:$0xff pattern:$0x75316420] }
 0x24a   : > { %2657 = vst [vmem:[%s4707_s30] sm:$0xff] %v2633_v2 }
 0x24e   : > { %2434 = vxpose.xlu0.b32.cont [9/16] (narrow) %v4944_v23, 8 }
 0x250   : > { %2496 = vxpose.xlu1.b32.cont [7/16] (narrow) %v4945_v15, 8  ;;  %v2634_v15 = vld.sshfl [vmem:[#allocation1 + $0x10] sm:$0xff pattern:$0x75316420] }
 0x251   : > { %2466 = vxpose.xlu2.b32.cont [9/16] (narrow) %v4946_v21, 8  ;;  %2658 = vst [vmem:[%s4707_s30 + $0x8] sm:$0xff] %v2634_v15 }
 0x256   : > { %2435 = vxpose.xlu0.b32.cont [10/16] (narrow) %v4947_v36, 8  ;;  %v4982_v36 = vld [vmem:[#allocation67_spill] sm:$0xff] }
 0x258   : > { %2497 = vxpose.xlu1.b32.cont [8/16] (narrow) %v4948_v4, 8 }
 0x259   : > { %2467 = vxpose.xlu2.b32.cont [10/16] (narrow) %v4949_v20, 8 }
 0x25e   : > { %2436 = vxpose.xlu0.b32.cont [11/16] (narrow) %v4198_v27, 8  ;;  %v4954_v27 = vld [vmem:[#allocation66_spill] sm:$0xff] }
 0x260   : > { %2498 = vxpose.xlu1.b32.cont [9/16] (narrow) %v4950_v61, 8  ;;  %v4983_v61 = vld [vmem:[#allocation69_spill] sm:$0xff] }
 0x261   : > { %2468 = vxpose.xlu2.b32.cont [11/16] (narrow) %v4211_v47, 8  ;;  %v4955_v47 = vld [vmem:[#allocation11_spill] sm:$0xff] }
 0x266   : > { %2437 = vxpose.xlu0.b32.cont [12/16] (narrow) %v4268_v56, 8  ;;  %v4956_v56 = vld [vmem:[#allocation8_spill] sm:$0xff] }
 0x268   : > { %2499 = vxpose.xlu1.b32.cont [10/16] (narrow) %v4951_v60, 8 }
 0x269   : > { %2469 = vxpose.xlu2.b32.cont [12/16] (narrow) %v4290_v48, 8  ;;  %v4958_v48 = vld [vmem:[#allocation14_spill] sm:$0xff] }
 0x26e   : > { %2438 = vxpose.xlu0.b32.cont [13/16] (narrow) %v4334_v59, 8  ;;  %v4959_v59 = vld [vmem:[#allocation22_spill] sm:$0xff] }
 0x270   : > { %2500 = vxpose.xlu1.b32.cont [11/16] (narrow) %v4952_v37, 8  ;;  %v2635_v37 = vld.sshfl [vmem:[#allocation1 + $0x20] sm:$0xff pattern:$0x75316420] }
 0x271   : > { %2470 = vxpose.xlu2.b32.cont [13/16] (narrow) %v4353_v45, 8  ;;  %v4957_v45 = vld [vmem:[#allocation16_spill] sm:$0xff]  ;;  %2659 = vst [vmem:[%s4707_s30 + $0x10] sm:$0xff] %v2635_v37 }
 0x276   : > { %2439 = vxpose.xlu0.b32.cont [14/16] (narrow) %v4422_v40, 8  ;;  %v4962_v40 = vld [vmem:[#allocation23_spill] sm:$0xff] }
 0x278   : > { %2501 = vxpose.xlu1.b32.cont [12/16] (narrow) %v4953_v18, 8 }
 0x279   : > { %2471 = vxpose.xlu2.b32.cont [14/16] (narrow) %v4428_v12, 8  ;;  %v4961_v12 = vld [vmem:[#allocation26_spill] sm:$0xff] }
 0x27e   : > { %2440 = vxpose.xlu0.b32.cont [15/16] (narrow) %v4497_v16, 8  ;;  %v4963_v16 = vld [vmem:[#allocation31_spill] sm:$0xff] }
 0x280   : > { %2502 = vxpose.xlu1.b32.cont [13/16] (narrow) %v4346_v57, 8  ;;  %v4960_v57 = vld [vmem:[#allocation21_spill] sm:$0xff] }
 0x281   : > { %2472 = vxpose.xlu2.b32.cont [15/16] (narrow) %v4520_v41, 8  ;;  %v4964_v41 = vld [vmem:[#allocation29_spill] sm:$0xff] }
 0x286   : > { %2441 = vxpose.xlu0.b32.end [16/16] (narrow) %v4571_v14, 8  ;;  %v4966_v14 = vld [vmem:[#allocation37_spill] sm:$0xff] }
 0x288   : > { %2503 = vxpose.xlu1.b32.cont [14/16] (narrow) %v4954_v27, 8 }
 0x289   : > { %2473 = vxpose.xlu2.b32.end [16/16] (narrow) %v4586_v54, 8  ;;  %v4967_v54 = vld [vmem:[#allocation41_spill] sm:$0xff] }
 0x28e   : > { %2522 = vxpose.xlu0.b32.start [1/16] (narrow) %v4955_v47, 8 }
 0x290   : > { %2504 = vxpose.xlu1.b32.cont [15/16] (narrow) %v4511_v29, 8  ;;  %v4965_v29 = vld [vmem:[#allocation36_spill] sm:$0xff] }
 0x291   : > { %2554 = vxpose.xlu2.b32.start [1/16] (narrow) %v4956_v56, 8 }
 0x296   : > { %2523 = vxpose.xlu0.b32.cont [2/16] (narrow) %v4957_v45, 8 }
 0x298   : > { %2505 = vxpose.xlu1.b32.end [16/16] (narrow) %v4577_v3, 8  ;;  %v4968_v3 = vld [vmem:[#allocation38_spill] sm:$0xff] }
 0x299   : > { %2555 = vxpose.xlu2.b32.cont [2/16] (narrow) %v4958_v48, 8 }
 0x29e   : > { %2524 = vxpose.xlu0.b32.cont [3/16] (narrow) %v4959_v59, 8 }
 0x2a1   : > { %2556 = vxpose.xlu2.b32.cont [3/16] (narrow) %v4960_v57, 8 }
 0x2a6   : > { %2525 = vxpose.xlu0.b32.cont [4/16] (narrow) %v4961_v12, 8 }
 0x2a9   : > { %2557 = vxpose.xlu2.b32.cont [4/16] (narrow) %v4962_v40, 8 }
 0x2aa   : > { %v2474_v34 = vpop.trf.xlu2 }
 0x2ab   : > { %v2598_v49 = vrot.slane %v2474_v34, 1  ;;  %v2610_v19 = vperm.slane %v2474_v34, 0 }
 0x2ad   : > { %v2611_v30 = vperm.slane %v2598_v49, 0  ;;  %2637 = vst [vmem:[#allocation1] ss:$2 sm:$0xff] %v2610_v19 }
 0x2ae   : > { %2526 = vxpose.xlu0.b32.cont [5/16] (narrow) %v4963_v16, 8 }
 0x2af   : > { %2638 = vst [vmem:[#allocation1 + $0x1] ss:$2 sm:$0xff] %v2611_v30 }
 0x2b1   : > { %2558 = vxpose.xlu2.b32.cont [5/16] (narrow) %v4964_v41, 8 }
 0x2b2   : > { %v2442_v33 = vpop.trf.xlu0 }
 0x2b3   : > { %v2597_v58 = vrot.slane %v2442_v33, 1  ;;  %v2608_v7 = vperm.slane %v2442_v33, 0 }
 0x2b5   : > { %v2609_v38 = vperm.slane %v2597_v58, 0  ;;  %2630 = vst [vmem:[#allocation1 + $0x30] ss:$2 sm:$0xff] %v2608_v7 }
 0x2b6   : > { %2527 = vxpose.xlu0.b32.cont [6/16] (narrow) %v4965_v29, 8  ;;  %v2645_v20 = vld.sshfl [vmem:[#allocation1] sm:$0xff pattern:$0x75316420] }
 0x2b7   : > { %2632 = vst [vmem:[#allocation1 + $0x31] ss:$2 sm:$0xff] %v2609_v38 }
 0x2b8   : > { %2661 = vst [vmem:[%s4707_s30 + $0x20] sm:$0xff] %v2645_v20 }
 0x2b9   : > { %2559 = vxpose.xlu2.b32.cont [6/16] (narrow) %v4966_v14, 8 }
 0x2be   : > { %2528 = vxpose.xlu0.b32.cont [7/16] (narrow) %v4967_v54, 8  ;;  %v2636_v4 = vld.sshfl [vmem:[#allocation1 + $0x30] sm:$0xff pattern:$0x75316420] }
 0x2bf   : > { %2660 = vst [vmem:[%s4707_s30 + $0x18] sm:$0xff] %v2636_v4 }
 0x2c1   : > { %2560 = vxpose.xlu2.b32.cont [7/16] (narrow) %v4968_v3, 8 }
 0x2c4   : > { %v2506_v31 = vpop.trf.xlu1 }
 0x2c5   : > { %v2599_v32 = vrot.slane %v2506_v31, 1  ;;  %v2612_v23 = vperm.slane %v2506_v31, 0 }
 0x2c6   : > { %2529 = vxpose.xlu0.b32.cont [8/16] (narrow) %v4969_v28, 8 }
 0x2c7   : > { %v2613_v21 = vperm.slane %v2599_v32, 0  ;;  %2639 = vst [vmem:[#allocation1 + $0x10] ss:$2 sm:$0xff] %v2612_v23 }
 0x2c9   : > { %2561 = vxpose.xlu2.b32.cont [8/16] (narrow) %v4970_v17, 8  ;;  %2640 = vst [vmem:[#allocation1 + $0x11] ss:$2 sm:$0xff] %v2613_v21 }
 0x2ce   : > { %2530 = vxpose.xlu0.b32.cont [9/16] (narrow) %v4971_v10, 8 }
 0x2d0   : > { %v2646_v60 = vld.sshfl [vmem:[#allocation1 + $0x10] sm:$0xff pattern:$0x75316420] }
 0x2d1   : > { %2562 = vxpose.xlu2.b32.cont [9/16] (narrow) %v4972_v63, 8  ;;  %2662 = vst [vmem:[%s4707_s30 + $0x28] sm:$0xff] %v2646_v60 }
 0x2d6   : > { %2531 = vxpose.xlu0.b32.cont [10/16] (narrow) %v4973_v1, 8 }
 0x2d9   : > { %2563 = vxpose.xlu2.b32.cont [10/16] (narrow) %v4974_v13, 8 }
 0x2de   : > { %2532 = vxpose.xlu0.b32.cont [11/16] (narrow) %v4975_v42, 8 }
 0x2e1   : > { %2564 = vxpose.xlu2.b32.cont [11/16] (narrow) %v4976_v22, 8 }
 0x2e6   : > { %2533 = vxpose.xlu0.b32.cont [12/16] (narrow) %v4977_v43, 8 }
 0x2e9   : > { %2565 = vxpose.xlu2.b32.cont [12/16] (narrow) %v4978_v55, 8 }
 0x2ee   : > { %2534 = vxpose.xlu0.b32.cont [13/16] (narrow) %v4979_v5, 8 }
 0x2f1   : > { %2566 = vxpose.xlu2.b32.cont [13/16] (narrow) %v4980_v6, 8 }
 0x2f6   : > { %2535 = vxpose.xlu0.b32.cont [14/16] (narrow) %v4981_v52, 8 }
 0x2f9   : > { %2567 = vxpose.xlu2.b32.cont [14/16] (narrow) %v4982_v36, 8 }
 0x2fe   : > { %2536 = vxpose.xlu0.b32.cont [15/16] (narrow) %v4514_v26, 8 }
 0x301   : > { %2568 = vxpose.xlu2.b32.cont [15/16] (narrow) %v4983_v61, 8 }
 0x306   : > { %2537 = vxpose.xlu0.b32.end [16/16] (narrow) %v4580_v62, 8 }
 0x309   : > { %2569 = vxpose.xlu2.b32.end [16/16] (narrow) %v4574_v0, 8 }
 0x32a   : > { %v2570_v18 = vpop.trf.xlu2 }
 0x32b   : > { %v2601_v27 = vrot.slane %v2570_v18, 1  ;;  %v2616_v47 = vperm.slane %v2570_v18, 0 }
 0x32d   : > { %v2617_v26 = vperm.slane %v2601_v27, 0  ;;  %2643 = vst [vmem:[#allocation1 + $0x30] ss:$2 sm:$0xff] %v2616_v47 }
 0x32f   : > { %2644 = vst [vmem:[#allocation1 + $0x31] ss:$2 sm:$0xff] %v2617_v26 }
 0x332   : > { %v2538_v56 = vpop.trf.xlu0 }
 0x333   : > { %v2600_v45 = vrot.slane %v2538_v56, 1  ;;  %v2614_v48 = vperm.slane %v2538_v56, 0 }
 0x335   : > { %v2615_v59 = vperm.slane %v2600_v45, 0  ;;  %2641 = vst [vmem:[#allocation1 + $0x20] ss:$2 sm:$0xff] %v2614_v48 }
 0x336   : > { %v2648_v0 = vld.sshfl [vmem:[#allocation1 + $0x30] sm:$0xff pattern:$0x75316420] }
 0x337   : > { %2664 = vst [vmem:[%s4707_s30 + $0x38] sm:$0xff] %v2648_v0 }
 0x338   : > { %2642 = vst [vmem:[#allocation1 + $0x21] ss:$2 sm:$0xff] %v2615_v59 }
 0x33f   : > { %v2647_v62 = vld.sshfl [vmem:[#allocation1 + $0x20] sm:$0xff pattern:$0x75316420] }
 0x340   : > { %2663 = vst [vmem:[%s4707_s30 + $0x30] sm:$0xff] %v2647_v62 }
 0x341   : > { %2971 = shalt.err (!%p2968_p10)
}
 0x342   : > { %s3093_s3 = smov 128   ;;  %s3094_s4 = smov 384  }
 0x343   : > { %2786 = dma.vmem_to_hbm [thread:$0]  (%p3156_p9), %s2681_s26, 1024, %s2683_s27, %s2666_s13, %s3093_s3, %s3094_s4, %s4902_s28  }
 0x344 PF: > { %p2797_p12 = scmp.ge.s32.totalorder %s3026_s11, 2  ;;  %s2697_s5 = sand.u32 1, %s3006_s6  }
 0x345   : > { %s2698_s29 = scalar_lea.sflag [#allocation4], %s2697_s5 }
 0x346   : > { %p2793_p13 = pnand %p2797_p12, %p3163_p11 }
 0x348   : > { %p2794_p0 = pneg %p2793_p13 }
 0x34a   : > { %3001 = dma.done.wait (%p2794_p0), %s2698_s29, 1024  }
 0x34b   : > { %3003 = vsyncadd (%p2794_p0), %s2698_s29, 4294966272  ;;  %s17_s11 = sadd.s32 1, %s3026_s11   ;;  %s4984_s6 = smov %s3010_s7 }
 0x34c   : > { %p14_p1 = scmp.ge.s32.totalorder %s17_s11, 5   ;;  %s4985_s7 = smov %s3014_s8 }
 0x34d   : > { %s4986_s8 = smov %s3161_s20  ;;  %s4987_s9 = smov %s3022_s10 }
 0x34e   : > { %s4988_s10 = smov %s4990_s14  ;;  %16 = sbr.rel (!%p14_p1) target bundleno = 6 (0x6), region = 76 }
 0x353   :  { %2704 = vsyncpa [#allocation3], 1 }
 0x354   :  { %2706 = vsyncpa [#allocation3 + $0x1], 1 }
 0x355   :  { %2707 = vsyncpa [#allocation4], 1 }
 0x356   :  { %2709 = vsyncpa [#allocation4 + $0x1], 1 }

</bundles_post_ra>
